<compile_context>
chip_gen: v5e
topology: v5e:2x2
jax: 0.10.0
libtpu: 0.0.40
codegen_flags: <defaults>
</compile_context>

<pallas_src>
import functools
import math

import jax
import jax.numpy as jnp
from jax import lax
from jax.experimental import pallas as pl
from jax.experimental.pallas import tpu as pltpu


def _round_up(n, m):
    return ((n + m - 1) // m) * m


# ------------------------- fused GRU + FC kernel -----------------------------

def _fused_gru_fc_kernel(*refs, time_chunk, Bc, Hp, num_layers, unroll):
    """One (batch-chunk, time-chunk) grid step: all GRU layers + final FC.

    Ref order (inputs, output, scratch):
      refs[0]                  x chunk  (rows, Ip)  bf16, rows = time_chunk*Bc
      refs[1 + 4*l + 0]        wi_l     (in_dim_p, 3Hp) bf16
      refs[1 + 4*l + 1]        wh_l     (Hp, 3Hp)       bf16
      refs[1 + 4*l + 2]        bgi_l    (1, 3Hp) f32 = bi + [bh_r, bh_z, 0]
      refs[1 + 4*l + 3]        bhn_l    (1, Hp)  f32 = bh_n
      refs[1 + 4*L + 0]        w_fc     (Hp, Op) bf16
      refs[1 + 4*L + 1]        b_fc     (1, Op)  f32
      refs[1 + 4*L + 2]        out      (rows, Op) f32
      refs[1 + 4*L + 3]        gi_s     (rows, 3Hp) f32  scratch
      refs[1 + 4*L + 4]        act_a    (rows, Hp)  f32  scratch (ping)
      refs[1 + 4*L + 5]        act_b    (rows, Hp)  f32  scratch (pong)
      refs[1 + 4*L + 6]        h_state  (L, Bc, Hp) f32  carried hidden state
    """
    x_ref = refs[0]
    base = 1 + 4 * num_layers
    w_fc_ref = refs[base + 0]
    b_fc_ref = refs[base + 1]
    out_ref = refs[base + 2]
    gi_s = refs[base + 3]
    act = (refs[base + 4], refs[base + 5])
    h_state = refs[base + 6]

    H3 = 3 * Hp

    # New batch chunk (first time chunk): reset carried hidden state (h_0 = 0).
    @pl.when(pl.program_id(1) == 0)
    def _init():
        h_state[...] = jnp.zeros_like(h_state)

    for layer in range(num_layers):          # static unroll over layers
        wi = refs[1 + 4 * layer + 0][...]    # bf16 (in_dim_p, 3Hp)
        wh = refs[1 + 4 * layer + 1][...]    # bf16 (Hp, 3Hp), loaded once
        b_gi = refs[1 + 4 * layer + 2][...]  # f32  (1, 3Hp)
        b_hn = refs[1 + 4 * layer + 3][...]  # f32  (1, Hp)

        xin = x_ref[...] if layer == 0 else act[(layer - 1) % 2][...]

        # Hoisted input projection: ONE MXU matmul over every timestep of the
        # chunk, bf16 operands, f32 accumulation, r/z hidden biases folded.
        gi_s[...] = jnp.dot(xin.astype(jnp.bfloat16), wi,
                            preferred_element_type=jnp.float32) + b_gi

        dst = act[layer % 2]
        h0 = h_state[layer]                  # (Bc, Hp) f32, carried across chunks

        # Only the truly sequential h @ Wh stays in the time loop.
        def step(t, h, *, wh=wh, b_hn=b_hn, dst=dst):
            row = pl.multiple_of(t * Bc, 8)  # 8-aligned sublane offset
            gi_t = gi_s[pl.ds(row, Bc), :]
            gh = jnp.dot(h.astype(jnp.bfloat16), wh,
                         preferred_element_type=jnp.float32)
            r = jax.nn.sigmoid(gi_t[:, 0:Hp] + gh[:, 0:Hp])
            z = jax.nn.sigmoid(gi_t[:, Hp:2 * Hp] + gh[:, Hp:2 * Hp])
            n = jnp.tanh(gi_t[:, 2 * Hp:H3] + r * (gh[:, 2 * Hp:H3] + b_hn))
            h_new = (1.0 - z) * n + z * h
            dst[pl.ds(row, Bc), :] = h_new
            return h_new

        h_state[layer] = lax.fori_loop(0, time_chunk, step, h0, unroll=unroll)

    # Fused, lane-dense output projection for the whole chunk.
    out_ref[...] = jnp.dot(act[(num_layers - 1) % 2][...].astype(jnp.bfloat16),
                           w_fc_ref[...],
                           preferred_element_type=jnp.float32) + b_fc_ref[...]


def fused_gru_fc_forward(x, kernel_params, *, hidden_size, output_size,
                         num_layers, time_chunk=None, batch_chunk=None):
    """x: (B, T, I) float32 -> (B, T, output_size) float32."""
    B, T, I = x.shape
    H, O, L = hidden_size, output_size, num_layers
    Hp = _round_up(H, 128)
    Ip = _round_up(I, 8)
    Op = _round_up(O, 128)                      # lane-dense output

    if batch_chunk is None:
        batch_chunk = min(_round_up(B, 8), 128)
    Bc = _round_up(batch_chunk, 8)
    Bp = _round_up(max(B, Bc), Bc)
    NB = Bp // Bc                               # batch chunks ("parallel")
    if time_chunk is None:
        time_chunk = max(1, min(T, 512 // Bc))  # ~512 rows per grid step
    T_pad = _round_up(T, time_chunk)
    NT = T_pad // time_chunk                    # time chunks ("arbitrary")
    rows = time_chunk * Bc

    # Pack x time-major per batch chunk: row = ((nb*T_pad)+t)*Bc + b_local.
    x_p = jnp.zeros((Bp, T_pad, Ip), jnp.float32).at[:B, :T, :I].set(x)
    x_p = x_p.reshape(NB, Bc, T_pad, Ip).transpose(0, 2, 1, 3)
    x_p = x_p.reshape(NB * T_pad * Bc, Ip).astype(jnp.bfloat16)

    inputs = [x_p] + list(kernel_params)

    def xio_map(nb, tc, *, NT=NT):
        return (nb * NT + tc, 0)

    in_specs = [pl.BlockSpec((rows, Ip), xio_map)]
    in_specs += [pl.BlockSpec(p.shape, lambda nb, tc: (0, 0))
                 for p in kernel_params]

    # Explicit VMEM budget: double-buffered weights + x/out chunks + scratch.
    w_bytes = sum(int(math.prod(p.shape)) * p.dtype.itemsize
                  for p in kernel_params)
    io_bytes = rows * Ip * 2 + rows * Op * 4
    scratch_bytes = rows * 3 * Hp * 4 + 2 * rows * Hp * 4 + L * Bc * Hp * 4
    est = 2 * (w_bytes + io_bytes) + scratch_bytes
    vmem_limit = int(min(64 * 2 ** 20, max(16 * 2 ** 20, 2 * est)))

    kernel = functools.partial(_fused_gru_fc_kernel,
                               time_chunk=time_chunk, Bc=Bc, Hp=Hp,
                               num_layers=L, unroll=min(time_chunk, 4))

    out2 = pl.pallas_call(
        kernel,
        out_shape=jax.ShapeDtypeStruct((NB * T_pad * Bc, Op), jnp.float32),
        grid_spec=pltpu.PrefetchScalarGridSpec(
            num_scalar_prefetch=0,
            grid=(NB, NT),
            in_specs=in_specs,
            out_specs=pl.BlockSpec((rows, Op), xio_map),
            scratch_shapes=[
                pltpu.VMEM((rows, 3 * Hp), jnp.float32),   # hoisted gi slab
                pltpu.VMEM((rows, Hp), jnp.float32),       # layer act (ping)
                pltpu.VMEM((rows, Hp), jnp.float32),       # layer act (pong)
                pltpu.VMEM((L, Bc, Hp), jnp.float32),      # carried hidden state
            ],
        ),
        compiler_params=pltpu.CompilerParams(
            dimension_semantics=("parallel", "arbitrary"),
            vmem_limit_bytes=vmem_limit),
    )(*inputs)

    out = out2.reshape(NB, T_pad, Bc, Op).transpose(0, 2, 1, 3)
    return out.reshape(Bp, T_pad, Op)[:B, :T, :O]


# --------------------------------- CoreModel --------------------------------

class CoreModelPallas:
    """CoreModel with backbone_type='gru' (GRU stack + Linear, output_size=2)."""

    def __init__(self, input_size, hidden_size, num_layers, key):
        self.input_size = input_size
        self.hidden_size = hidden_size
        self.num_layers = num_layers
        self.output_size = 2

        H, I, O = hidden_size, input_size, self.output_size
        Hp = _round_up(H, 128)
        Ip = _round_up(I, 8)
        Op = _round_up(O, 128)

        bound = 1.0 / math.sqrt(H)
        params = {}
        keys = jax.random.split(key, num_layers * 4 + 2)
        ki = 0
        for layer in range(num_layers):
            in_dim = I if layer == 0 else H
            # stored pre-transposed: (in_dim, 3H), (H, 3H); gates [r|z|n]
            params[f"wi_{layer}"] = jax.random.uniform(
                keys[ki], (in_dim, 3 * H), jnp.float32, -bound, bound); ki += 1
            params[f"wh_{layer}"] = jax.random.uniform(
                keys[ki], (H, 3 * H), jnp.float32, -bound, bound); ki += 1
            params[f"bi_{layer}"] = jax.random.uniform(
                keys[ki], (1, 3 * H), jnp.float32, -bound, bound); ki += 1
            params[f"bh_{layer}"] = jax.random.uniform(
                keys[ki], (1, 3 * H), jnp.float32, -bound, bound); ki += 1
        params["w_fc"] = jax.random.uniform(
            keys[ki], (H, O), jnp.float32, -bound, bound); ki += 1
        params["b_fc"] = jax.random.uniform(
            keys[ki], (1, O), jnp.float32, -bound, bound)
        self.params = params

        # (8,128)-padded, per-gate-scattered, bf16 kernel params.
        # b_gi = bi + [bh_r, bh_z, 0] (r/z hidden biases hoisted);
        # b_hn stays separate: PyTorch keeps it inside r * (h @ Wh_n + bh_n).
        kp = []
        for layer in range(num_layers):
            in_dim = I if layer == 0 else H
            in_dim_p = Ip if layer == 0 else Hp
            wi = params[f"wi_{layer}"]
            wh = params[f"wh_{layer}"]
            bi = params[f"bi_{layer}"]
            bh = params[f"bh_{layer}"]
            b_gi = bi.at[:, :2 * H].add(bh[:, :2 * H])

            wi_p = jnp.zeros((in_dim_p, 3 * Hp), jnp.float32)
            wh_p = jnp.zeros((Hp, 3 * Hp), jnp.float32)
            bgi_p = jnp.zeros((1, 3 * Hp), jnp.float32)
            for g in range(3):
                wi_p = wi_p.at[:in_dim, g * Hp:g * Hp + H].set(
                    wi[:, g * H:(g + 1) * H])
                wh_p = wh_p.at[:H, g * Hp:g * Hp + H].set(
                    wh[:, g * H:(g + 1) * H])
                bgi_p = bgi_p.at[:, g * Hp:g * Hp + H].set(
                    b_gi[:, g * H:(g + 1) * H])
            bhn_p = jnp.zeros((1, Hp), jnp.float32).at[:, :H].set(bh[:, 2 * H:])
            kp += [wi_p.astype(jnp.bfloat16), wh_p.astype(jnp.bfloat16),
                   bgi_p, bhn_p]

        w_fc_p = jnp.zeros((Hp, Op), jnp.float32).at[:H, :O].set(params["w_fc"])
        b_fc_p = jnp.zeros((1, Op), jnp.float32).at[:, :O].set(params["b_fc"])
        kp += [w_fc_p.astype(jnp.bfloat16), b_fc_p]
        self.kernel_params = kp

    def __call__(self, x, time_chunk=None):
        # x: (B, T, input_size)  ->  (B, T, 2)
        return fused_gru_fc_forward(
            x, self.kernel_params,
            hidden_size=self.hidden_size,
            output_size=self.output_size,
            num_layers=self.num_layers,
            time_chunk=time_chunk)


# ----------------------------- pure-JAX reference ----------------------------

def _ref_forward(model, x):
    """Reference mirroring the kernel's precision policy
    (bf16 MXU operands, f32 accumulation and gate math)."""
    B, T, _ = x.shape
    H = model.hidden_size
    bf16 = jnp.bfloat16
    seq = x
    for layer in range(model.num_layers):
        wi = model.params[f"wi_{layer}"].astype(bf16)
        wh = model.params[f"wh_{layer}"].astype(bf16)
        bi = model.params[f"bi_{layer}"][0]
        bh = model.params[f"bh_{layer}"][0]
        h = jnp.zeros((B, H), jnp.float32)
        outs = []
        for t in range(T):
            gi = jnp.dot(seq[:, t, :].astype(bf16), wi,
                         preferred_element_type=jnp.float32) + bi
            gh = jnp.dot(h.astype(bf16), wh,
                         preferred_element_type=jnp.float32) + bh
            r = jax.nn.sigmoid(gi[:, :H] + gh[:, :H])
            z = jax.nn.sigmoid(gi[:, H:2 * H] + gh[:, H:2 * H])
            n = jnp.tanh(gi[:, 2 * H:] + r * gh[:, 2 * H:])
            h = (1.0 - z) * n + z * h
            outs.append(h)
        seq = jnp.stack(outs, axis=1)
    out = jnp.dot(seq.astype(bf16), model.params["w_fc"].astype(bf16),
                  preferred_element_type=jnp.float32) + model.params["b_fc"][0]
    return out


if __name__ == "__main__":
    key = jax.random.PRNGKey(0)
    k_param, k_x = jax.random.split(key)

    batch, seq_len, input_size, hidden_size, num_layers = 2, 8, 6, 32, 2
    model = CoreModelPallas(input_size, hidden_size, num_layers, k_param)

    x = jax.random.normal(k_x, (batch, seq_len, input_size), jnp.float32)

    # time_chunk=4 -> 2 pipelined grid steps; exercises the carried h state.
    out = jax.block_until_ready(model(x, time_chunk=4))

    ref = _ref_forward(model, x)
    assert out.shape == (batch, seq_len, 2)
    assert jnp.allclose(out, ref, atol=2e-3, rtol=2e-3), "mismatch vs reference"

    print("KERNEL_OK")
</pallas_src>

<mosaic_0001>
module attributes {stable_mosaic.version = 11 : i64} {
  func.func @_fused_gru_fc_kernel(%arg0: i32, %arg1: i32, %arg2: memref<32x8xbf16, #tpu.memory_space<vmem>>, %arg3: memref<8x384xbf16, #tpu.memory_space<vmem>>, %arg4: memref<128x384xbf16, #tpu.memory_space<vmem>>, %arg5: memref<1x384xf32, #tpu.memory_space<vmem>>, %arg6: memref<1x128xf32, #tpu.memory_space<vmem>>, %arg7: memref<128x384xbf16, #tpu.memory_space<vmem>>, %arg8: memref<128x384xbf16, #tpu.memory_space<vmem>>, %arg9: memref<1x384xf32, #tpu.memory_space<vmem>>, %arg10: memref<1x128xf32, #tpu.memory_space<vmem>>, %arg11: memref<128x128xbf16, #tpu.memory_space<vmem>>, %arg12: memref<1x128xf32, #tpu.memory_space<vmem>>, %arg13: memref<32x128xf32, #tpu.memory_space<vmem>>, %arg14: memref<32x384xf32, #tpu.memory_space<vmem>>, %arg15: memref<32x128xf32, #tpu.memory_space<vmem>>, %arg16: memref<32x128xf32, #tpu.memory_space<vmem>>, %arg17: memref<2x8x128xf32, #tpu.memory_space<vmem>>) attributes {dimension_semantics = [#tpu.dimension_semantics<parallel>, #tpu.dimension_semantics<arbitrary>], iteration_bounds = array<i64: 1, 2>, scalar_prefetch = 0 : i64, scratch_operands = 4 : i64, tpu.core_type = #tpu.core_type<tc>, window_params = [{transform_indices = @transform_0, window_bounds = array<i64: 32, 8>}, {pipeline_mode = #tpu.pipeline_mode<synchronous>, transform_indices = @transform_1, window_bounds = array<i64: 8, 384>}, {pipeline_mode = #tpu.pipeline_mode<synchronous>, transform_indices = @transform_2, window_bounds = array<i64: 128, 384>}, {pipeline_mode = #tpu.pipeline_mode<synchronous>, transform_indices = @transform_3, window_bounds = array<i64: 1, 384>}, {pipeline_mode = #tpu.pipeline_mode<synchronous>, transform_indices = @transform_4, window_bounds = array<i64: 1, 128>}, {pipeline_mode = #tpu.pipeline_mode<synchronous>, transform_indices = @transform_5, window_bounds = array<i64: 128, 384>}, {pipeline_mode = #tpu.pipeline_mode<synchronous>, transform_indices = @transform_6, window_bounds = array<i64: 128, 384>}, {pipeline_mode = #tpu.pipeline_mode<synchronous>, transform_indices = @transform_7, window_bounds = array<i64: 1, 384>}, {pipeline_mode = #tpu.pipeline_mode<synchronous>, transform_indices = @transform_8, window_bounds = array<i64: 1, 128>}, {pipeline_mode = #tpu.pipeline_mode<synchronous>, transform_indices = @transform_9, window_bounds = array<i64: 128, 128>}, {pipeline_mode = #tpu.pipeline_mode<synchronous>, transform_indices = @transform_10, window_bounds = array<i64: 1, 128>}, {transform_indices = @transform_11, window_bounds = array<i64: 32, 128>}]} {
    %c0_i32 = arith.constant 0 : i32
    %0 = arith.cmpi eq, %arg1, %c0_i32 : i32
    %1 = arith.extui %0 : i1 to i32
    %c0_i32_0 = arith.constant 0 : i32
    %2 = arith.cmpi ne, %1, %c0_i32_0 : i32
    scf.if %2 {
      %cst_106 = arith.constant 0.000000e+00 : f32
      %328 = vector.broadcast %cst_106 : f32 to vector<2x8x128xf32>
      %c0_107 = arith.constant 0 : index
      %c0_108 = arith.constant 0 : index
      %c0_109 = arith.constant 0 : index
      %329 = vector.load %arg17[%c0_107, %c0_108, %c0_109] : memref<2x8x128xf32, #tpu.memory_space<vmem>>, vector<2x8x128xf32>
      tpu.vector_store %arg17[%c0_107, %c0_108, %c0_109], %328 {strides = array<i32>} : memref<2x8x128xf32, #tpu.memory_space<vmem>>, vector<2x8x128xf32>,
    } else {
    }
    %c0 = arith.constant 0 : index
    %c0_1 = arith.constant 0 : index
    %3 = vector.load %arg3[%c0, %c0_1] : memref<8x384xbf16, #tpu.memory_space<vmem>>, vector<8x384xbf16>
    %c0_2 = arith.constant 0 : index
    %c0_3 = arith.constant 0 : index
    %4 = vector.load %arg4[%c0_2, %c0_3] : memref<128x384xbf16, #tpu.memory_space<vmem>>, vector<128x384xbf16>
    %c0_4 = arith.constant 0 : index
    %c0_5 = arith.constant 0 : index
    %5 = vector.load %arg5[%c0_4, %c0_5] : memref<1x384xf32, #tpu.memory_space<vmem>>, vector<1x384xf32>
    %c0_6 = arith.constant 0 : index
    %c0_7 = arith.constant 0 : index
    %6 = vector.load %arg6[%c0_6, %c0_7] : memref<1x128xf32, #tpu.memory_space<vmem>>, vector<1x128xf32>
    %c0_8 = arith.constant 0 : index
    %c0_9 = arith.constant 0 : index
    %7 = vector.load %arg2[%c0_8, %c0_9] : memref<32x8xbf16, #tpu.memory_space<vmem>>, vector<32x8xbf16>
    %cst = arith.constant dense<0.000000e+00> : vector<32x384xf32>
    %8 = tpu.matmul %7, %3, %cst {dimension_numbers = #tpu.dot_dimension_numbers<[1], [0], [0], [1], [0, 0, 1, 1], [], []>} : vector<32x8xbf16>, vector<8x384xbf16>, vector<32x384xf32> -> vector<32x384xf32>
    %9 = vector.broadcast %5 : vector<1x384xf32> to vector<32x384xf32>
    %10 = arith.addf %8, %9 : vector<32x384xf32>
    %c0_10 = arith.constant 0 : index
    %c0_11 = arith.constant 0 : index
    %11 = vector.load %arg14[%c0_10, %c0_11] : memref<32x384xf32, #tpu.memory_space<vmem>>, vector<32x384xf32>
    tpu.vector_store %arg14[%c0_10, %c0_11], %10 {strides = array<i32>} : memref<32x384xf32, #tpu.memory_space<vmem>>, vector<32x384xf32>,
    %c0_12 = arith.constant 0 : index
    %c0_13 = arith.constant 0 : index
    %c0_14 = arith.constant 0 : index
    %12 = vector.load %arg17[%c0_12, %c0_13, %c0_14] : memref<2x8x128xf32, #tpu.memory_space<vmem>>, vector<1x8x128xf32>
    %13 = vector.shape_cast %12 : vector<1x8x128xf32> to vector<8x128xf32>
    %c0_i32_15 = arith.constant 0 : i32
    %c8_i32 = arith.constant 8 : i32
    %14 = arith.muli %c0_i32_15, %c8_i32 : i32
    %15 = tpu.assume_multiple %14, 8 : i32
    %16 = arith.index_cast %15 : i32 to index
    %c0_16 = arith.constant 0 : index
    %17 = vector.load %arg14[%16, %c0_16] : memref<32x384xf32, #tpu.memory_space<vmem>>, vector<8x384xf32>
    %18 = arith.truncf %13 : vector<8x128xf32> to vector<8x128xbf16>
    %cst_17 = arith.constant dense<0.000000e+00> : vector<8x384xf32>
    %19 = tpu.matmul %18, %4, %cst_17 {dimension_numbers = #tpu.dot_dimension_numbers<[1], [0], [0], [1], [0, 0, 1, 1], [], []>} : vector<8x128xbf16>, vector<128x384xbf16>, vector<8x384xf32> -> vector<8x384xf32>
    %20 = vector.extract_strided_slice %17 {offsets = [0, 0], sizes = [8, 128], strides = [1, 1]} : vector<8x384xf32> to vector<8x128xf32>
    %21 = vector.extract_strided_slice %19 {offsets = [0, 0], sizes = [8, 128], strides = [1, 1]} : vector<8x384xf32> to vector<8x128xf32>
    %22 = arith.addf %20, %21 : vector<8x128xf32>
    %23 = arith.negf %22 : vector<8x128xf32>
    %24 = math.exp %23 : vector<8x128xf32>
    %cst_18 = arith.constant 1.000000e+00 : f32
    %25 = vector.broadcast %cst_18 : f32 to vector<8x128xf32>
    %26 = arith.addf %25, %24 : vector<8x128xf32>
    %27 = arith.divf %25, %26 : vector<8x128xf32>
    %28 = vector.extract_strided_slice %17 {offsets = [0, 128], sizes = [8, 128], strides = [1, 1]} : vector<8x384xf32> to vector<8x128xf32>
    %29 = vector.extract_strided_slice %19 {offsets = [0, 128], sizes = [8, 128], strides = [1, 1]} : vector<8x384xf32> to vector<8x128xf32>
    %30 = arith.addf %28, %29 : vector<8x128xf32>
    %31 = arith.negf %30 : vector<8x128xf32>
    %32 = math.exp %31 : vector<8x128xf32>
    %cst_19 = arith.constant 1.000000e+00 : f32
    %33 = vector.broadcast %cst_19 : f32 to vector<8x128xf32>
    %34 = arith.addf %33, %32 : vector<8x128xf32>
    %35 = arith.divf %33, %34 : vector<8x128xf32>
    %36 = vector.extract_strided_slice %17 {offsets = [0, 256], sizes = [8, 128], strides = [1, 1]} : vector<8x384xf32> to vector<8x128xf32>
    %37 = vector.extract_strided_slice %19 {offsets = [0, 256], sizes = [8, 128], strides = [1, 1]} : vector<8x384xf32> to vector<8x128xf32>
    %38 = vector.broadcast %6 : vector<1x128xf32> to vector<8x128xf32>
    %39 = arith.addf %37, %38 : vector<8x128xf32>
    %40 = arith.mulf %27, %39 : vector<8x128xf32>
    %41 = arith.addf %36, %40 : vector<8x128xf32>
    %42 = math.tanh %41 : vector<8x128xf32>
    %cst_20 = arith.constant 1.000000e+00 : f32
    %43 = vector.broadcast %cst_20 : f32 to vector<8x128xf32>
    %44 = arith.subf %43, %35 : vector<8x128xf32>
    %45 = arith.mulf %44, %42 : vector<8x128xf32>
    %46 = arith.mulf %35, %13 : vector<8x128xf32>
    %47 = arith.addf %45, %46 : vector<8x128xf32>
    %48 = arith.index_cast %15 : i32 to index
    %c0_21 = arith.constant 0 : index
    %49 = vector.load %arg15[%48, %c0_21] : memref<32x128xf32, #tpu.memory_space<vmem>>, vector<8x128xf32>
    tpu.vector_store %arg15[%48, %c0_21], %47 {strides = array<i32>} : memref<32x128xf32, #tpu.memory_space<vmem>>, vector<8x128xf32>,
    %c1_i32 = arith.constant 1 : i32
    %c8_i32_22 = arith.constant 8 : i32
    %50 = arith.muli %c1_i32, %c8_i32_22 : i32
    %51 = tpu.assume_multiple %50, 8 : i32
    %52 = arith.index_cast %51 : i32 to index
    %c0_23 = arith.constant 0 : index
    %53 = vector.load %arg14[%52, %c0_23] : memref<32x384xf32, #tpu.memory_space<vmem>>, vector<8x384xf32>
    %54 = arith.truncf %47 : vector<8x128xf32> to vector<8x128xbf16>
    %cst_24 = arith.constant dense<0.000000e+00> : vector<8x384xf32>
    %55 = tpu.matmul %54, %4, %cst_24 {dimension_numbers = #tpu.dot_dimension_numbers<[1], [0], [0], [1], [0, 0, 1, 1], [], []>} : vector<8x128xbf16>, vector<128x384xbf16>, vector<8x384xf32> -> vector<8x384xf32>
    %56 = vector.extract_strided_slice %53 {offsets = [0, 0], sizes = [8, 128], strides = [1, 1]} : vector<8x384xf32> to vector<8x128xf32>
    %57 = vector.extract_strided_slice %55 {offsets = [0, 0], sizes = [8, 128], strides = [1, 1]} : vector<8x384xf32> to vector<8x128xf32>
    %58 = arith.addf %56, %57 : vector<8x128xf32>
    %59 = arith.negf %58 : vector<8x128xf32>
    %60 = math.exp %59 : vector<8x128xf32>
    %cst_25 = arith.constant 1.000000e+00 : f32
    %61 = vector.broadcast %cst_25 : f32 to vector<8x128xf32>
    %62 = arith.addf %61, %60 : vector<8x128xf32>
    %63 = arith.divf %61, %62 : vector<8x128xf32>
    %64 = vector.extract_strided_slice %53 {offsets = [0, 128], sizes = [8, 128], strides = [1, 1]} : vector<8x384xf32> to vector<8x128xf32>
    %65 = vector.extract_strided_slice %55 {offsets = [0, 128], sizes = [8, 128], strides = [1, 1]} : vector<8x384xf32> to vector<8x128xf32>
    %66 = arith.addf %64, %65 : vector<8x128xf32>
    %67 = arith.negf %66 : vector<8x128xf32>
    %68 = math.exp %67 : vector<8x128xf32>
    %cst_26 = arith.constant 1.000000e+00 : f32
    %69 = vector.broadcast %cst_26 : f32 to vector<8x128xf32>
    %70 = arith.addf %69, %68 : vector<8x128xf32>
    %71 = arith.divf %69, %70 : vector<8x128xf32>
    %72 = vector.extract_strided_slice %53 {offsets = [0, 256], sizes = [8, 128], strides = [1, 1]} : vector<8x384xf32> to vector<8x128xf32>
    %73 = vector.extract_strided_slice %55 {offsets = [0, 256], sizes = [8, 128], strides = [1, 1]} : vector<8x384xf32> to vector<8x128xf32>
    %74 = vector.broadcast %6 : vector<1x128xf32> to vector<8x128xf32>
    %75 = arith.addf %73, %74 : vector<8x128xf32>
    %76 = arith.mulf %63, %75 : vector<8x128xf32>
    %77 = arith.addf %72, %76 : vector<8x128xf32>
    %78 = math.tanh %77 : vector<8x128xf32>
    %cst_27 = arith.constant 1.000000e+00 : f32
    %79 = vector.broadcast %cst_27 : f32 to vector<8x128xf32>
    %80 = arith.subf %79, %71 : vector<8x128xf32>
    %81 = arith.mulf %80, %78 : vector<8x128xf32>
    %82 = arith.mulf %71, %47 : vector<8x128xf32>
    %83 = arith.addf %81, %82 : vector<8x128xf32>
    %84 = arith.index_cast %51 : i32 to index
    %c0_28 = arith.constant 0 : index
    %85 = vector.load %arg15[%84, %c0_28] : memref<32x128xf32, #tpu.memory_space<vmem>>, vector<8x128xf32>
    tpu.vector_store %arg15[%84, %c0_28], %83 {strides = array<i32>} : memref<32x128xf32, #tpu.memory_space<vmem>>, vector<8x128xf32>,
    %c2_i32 = arith.constant 2 : i32
    %c8_i32_29 = arith.constant 8 : i32
    %86 = arith.muli %c2_i32, %c8_i32_29 : i32
    %87 = tpu.assume_multiple %86, 8 : i32
    %88 = arith.index_cast %87 : i32 to index
    %c0_30 = arith.constant 0 : index
    %89 = vector.load %arg14[%88, %c0_30] : memref<32x384xf32, #tpu.memory_space<vmem>>, vector<8x384xf32>
    %90 = arith.truncf %83 : vector<8x128xf32> to vector<8x128xbf16>
    %cst_31 = arith.constant dense<0.000000e+00> : vector<8x384xf32>
    %91 = tpu.matmul %90, %4, %cst_31 {dimension_numbers = #tpu.dot_dimension_numbers<[1], [0], [0], [1], [0, 0, 1, 1], [], []>} : vector<8x128xbf16>, vector<128x384xbf16>, vector<8x384xf32> -> vector<8x384xf32>
    %92 = vector.extract_strided_slice %89 {offsets = [0, 0], sizes = [8, 128], strides = [1, 1]} : vector<8x384xf32> to vector<8x128xf32>
    %93 = vector.extract_strided_slice %91 {offsets = [0, 0], sizes = [8, 128], strides = [1, 1]} : vector<8x384xf32> to vector<8x128xf32>
    %94 = arith.addf %92, %93 : vector<8x128xf32>
    %95 = arith.negf %94 : vector<8x128xf32>
    %96 = math.exp %95 : vector<8x128xf32>
    %cst_32 = arith.constant 1.000000e+00 : f32
    %97 = vector.broadcast %cst_32 : f32 to vector<8x128xf32>
    %98 = arith.addf %97, %96 : vector<8x128xf32>
    %99 = arith.divf %97, %98 : vector<8x128xf32>
    %100 = vector.extract_strided_slice %89 {offsets = [0, 128], sizes = [8, 128], strides = [1, 1]} : vector<8x384xf32> to vector<8x128xf32>
    %101 = vector.extract_strided_slice %91 {offsets = [0, 128], sizes = [8, 128], strides = [1, 1]} : vector<8x384xf32> to vector<8x128xf32>
    %102 = arith.addf %100, %101 : vector<8x128xf32>
    %103 = arith.negf %102 : vector<8x128xf32>
    %104 = math.exp %103 : vector<8x128xf32>
    %cst_33 = arith.constant 1.000000e+00 : f32
    %105 = vector.broadcast %cst_33 : f32 to vector<8x128xf32>
    %106 = arith.addf %105, %104 : vector<8x128xf32>
    %107 = arith.divf %105, %106 : vector<8x128xf32>
    %108 = vector.extract_strided_slice %89 {offsets = [0, 256], sizes = [8, 128], strides = [1, 1]} : vector<8x384xf32> to vector<8x128xf32>
    %109 = vector.extract_strided_slice %91 {offsets = [0, 256], sizes = [8, 128], strides = [1, 1]} : vector<8x384xf32> to vector<8x128xf32>
    %110 = vector.broadcast %6 : vector<1x128xf32> to vector<8x128xf32>
    %111 = arith.addf %109, %110 : vector<8x128xf32>
    %112 = arith.mulf %99, %111 : vector<8x128xf32>
    %113 = arith.addf %108, %112 : vector<8x128xf32>
    %114 = math.tanh %113 : vector<8x128xf32>
    %cst_34 = arith.constant 1.000000e+00 : f32
    %115 = vector.broadcast %cst_34 : f32 to vector<8x128xf32>
    %116 = arith.subf %115, %107 : vector<8x128xf32>
    %117 = arith.mulf %116, %114 : vector<8x128xf32>
    %118 = arith.mulf %107, %83 : vector<8x128xf32>
    %119 = arith.addf %117, %118 : vector<8x128xf32>
    %120 = arith.index_cast %87 : i32 to index
    %c0_35 = arith.constant 0 : index
    %121 = vector.load %arg15[%120, %c0_35] : memref<32x128xf32, #tpu.memory_space<vmem>>, vector<8x128xf32>
    tpu.vector_store %arg15[%120, %c0_35], %119 {strides = array<i32>} : memref<32x128xf32, #tpu.memory_space<vmem>>, vector<8x128xf32>,
    %c3_i32 = arith.constant 3 : i32
    %c8_i32_36 = arith.constant 8 : i32
    %122 = arith.muli %c3_i32, %c8_i32_36 : i32
    %123 = tpu.assume_multiple %122, 8 : i32
    %124 = arith.index_cast %123 : i32 to index
    %c0_37 = arith.constant 0 : index
    %125 = vector.load %arg14[%124, %c0_37] : memref<32x384xf32, #tpu.memory_space<vmem>>, vector<8x384xf32>
    %126 = arith.truncf %119 : vector<8x128xf32> to vector<8x128xbf16>
    %cst_38 = arith.constant dense<0.000000e+00> : vector<8x384xf32>
    %127 = tpu.matmul %126, %4, %cst_38 {dimension_numbers = #tpu.dot_dimension_numbers<[1], [0], [0], [1], [0, 0, 1, 1], [], []>} : vector<8x128xbf16>, vector<128x384xbf16>, vector<8x384xf32> -> vector<8x384xf32>
    %128 = vector.extract_strided_slice %125 {offsets = [0, 0], sizes = [8, 128], strides = [1, 1]} : vector<8x384xf32> to vector<8x128xf32>
    %129 = vector.extract_strided_slice %127 {offsets = [0, 0], sizes = [8, 128], strides = [1, 1]} : vector<8x384xf32> to vector<8x128xf32>
    %130 = arith.addf %128, %129 : vector<8x128xf32>
    %131 = arith.negf %130 : vector<8x128xf32>
    %132 = math.exp %131 : vector<8x128xf32>
    %cst_39 = arith.constant 1.000000e+00 : f32
    %133 = vector.broadcast %cst_39 : f32 to vector<8x128xf32>
    %134 = arith.addf %133, %132 : vector<8x128xf32>
    %135 = arith.divf %133, %134 : vector<8x128xf32>
    %136 = vector.extract_strided_slice %125 {offsets = [0, 128], sizes = [8, 128], strides = [1, 1]} : vector<8x384xf32> to vector<8x128xf32>
    %137 = vector.extract_strided_slice %127 {offsets = [0, 128], sizes = [8, 128], strides = [1, 1]} : vector<8x384xf32> to vector<8x128xf32>
    %138 = arith.addf %136, %137 : vector<8x128xf32>
    %139 = arith.negf %138 : vector<8x128xf32>
    %140 = math.exp %139 : vector<8x128xf32>
    %cst_40 = arith.constant 1.000000e+00 : f32
    %141 = vector.broadcast %cst_40 : f32 to vector<8x128xf32>
    %142 = arith.addf %141, %140 : vector<8x128xf32>
    %143 = arith.divf %141, %142 : vector<8x128xf32>
    %144 = vector.extract_strided_slice %125 {offsets = [0, 256], sizes = [8, 128], strides = [1, 1]} : vector<8x384xf32> to vector<8x128xf32>
    %145 = vector.extract_strided_slice %127 {offsets = [0, 256], sizes = [8, 128], strides = [1, 1]} : vector<8x384xf32> to vector<8x128xf32>
    %146 = vector.broadcast %6 : vector<1x128xf32> to vector<8x128xf32>
    %147 = arith.addf %145, %146 : vector<8x128xf32>
    %148 = arith.mulf %135, %147 : vector<8x128xf32>
    %149 = arith.addf %144, %148 : vector<8x128xf32>
    %150 = math.tanh %149 : vector<8x128xf32>
    %cst_41 = arith.constant 1.000000e+00 : f32
    %151 = vector.broadcast %cst_41 : f32 to vector<8x128xf32>
    %152 = arith.subf %151, %143 : vector<8x128xf32>
    %153 = arith.mulf %152, %150 : vector<8x128xf32>
    %154 = arith.mulf %143, %119 : vector<8x128xf32>
    %155 = arith.addf %153, %154 : vector<8x128xf32>
    %156 = arith.index_cast %123 : i32 to index
    %c0_42 = arith.constant 0 : index
    %157 = vector.load %arg15[%156, %c0_42] : memref<32x128xf32, #tpu.memory_space<vmem>>, vector<8x128xf32>
    tpu.vector_store %arg15[%156, %c0_42], %155 {strides = array<i32>} : memref<32x128xf32, #tpu.memory_space<vmem>>, vector<8x128xf32>,
    %c4_i32 = arith.constant 4 : i32
    %c0_43 = arith.constant 0 : index
    %c0_44 = arith.constant 0 : index
    %c0_45 = arith.constant 0 : index
    %158 = vector.load %arg17[%c0_43, %c0_44, %c0_45] : memref<2x8x128xf32, #tpu.memory_space<vmem>>, vector<1x8x128xf32>
    %159 = vector.shape_cast %158 : vector<1x8x128xf32> to vector<8x128xf32>
    %160 = vector.shape_cast %155 : vector<8x128xf32> to vector<1x8x128xf32>
    tpu.vector_store %arg17[%c0_43, %c0_44, %c0_45], %160 {strides = array<i32>} : memref<2x8x128xf32, #tpu.memory_space<vmem>>, vector<1x8x128xf32>,
    %c0_46 = arith.constant 0 : index
    %c0_47 = arith.constant 0 : index
    %161 = vector.load %arg7[%c0_46, %c0_47] : memref<128x384xbf16, #tpu.memory_space<vmem>>, vector<128x384xbf16>
    %c0_48 = arith.constant 0 : index
    %c0_49 = arith.constant 0 : index
    %162 = vector.load %arg8[%c0_48, %c0_49] : memref<128x384xbf16, #tpu.memory_space<vmem>>, vector<128x384xbf16>
    %c0_50 = arith.constant 0 : index
    %c0_51 = arith.constant 0 : index
    %163 = vector.load %arg9[%c0_50, %c0_51] : memref<1x384xf32, #tpu.memory_space<vmem>>, vector<1x384xf32>
    %c0_52 = arith.constant 0 : index
    %c0_53 = arith.constant 0 : index
    %164 = vector.load %arg10[%c0_52, %c0_53] : memref<1x128xf32, #tpu.memory_space<vmem>>, vector<1x128xf32>
    %c0_54 = arith.constant 0 : index
    %c0_55 = arith.constant 0 : index
    %165 = vector.load %arg15[%c0_54, %c0_55] : memref<32x128xf32, #tpu.memory_space<vmem>>, vector<32x128xf32>
    %166 = arith.truncf %165 : vector<32x128xf32> to vector<32x128xbf16>
    %cst_56 = arith.constant dense<0.000000e+00> : vector<32x384xf32>
    %167 = tpu.matmul %166, %161, %cst_56 {dimension_numbers = #tpu.dot_dimension_numbers<[1], [0], [0], [1], [0, 0, 1, 1], [], []>} : vector<32x128xbf16>, vector<128x384xbf16>, vector<32x384xf32> -> vector<32x384xf32>
    %168 = vector.broadcast %163 : vector<1x384xf32> to vector<32x384xf32>
    %169 = arith.addf %167, %168 : vector<32x384xf32>
    %c0_57 = arith.constant 0 : index
    %c0_58 = arith.constant 0 : index
    %170 = vector.load %arg14[%c0_57, %c0_58] : memref<32x384xf32, #tpu.memory_space<vmem>>, vector<32x384xf32>
    tpu.vector_store %arg14[%c0_57, %c0_58], %169 {strides = array<i32>} : memref<32x384xf32, #tpu.memory_space<vmem>>, vector<32x384xf32>,
    %c1 = arith.constant 1 : index
    %c0_59 = arith.constant 0 : index
    %c0_60 = arith.constant 0 : index
    %171 = vector.load %arg17[%c1, %c0_59, %c0_60] : memref<2x8x128xf32, #tpu.memory_space<vmem>>, vector<1x8x128xf32>
    %172 = vector.shape_cast %171 : vector<1x8x128xf32> to vector<8x128xf32>
    %c0_i32_61 = arith.constant 0 : i32
    %c8_i32_62 = arith.constant 8 : i32
    %173 = arith.muli %c0_i32_61, %c8_i32_62 : i32
    %174 = tpu.assume_multiple %173, 8 : i32
    %175 = arith.index_cast %174 : i32 to index
    %c0_63 = arith.constant 0 : index
    %176 = vector.load %arg14[%175, %c0_63] : memref<32x384xf32, #tpu.memory_space<vmem>>, vector<8x384xf32>
    %177 = arith.truncf %172 : vector<8x128xf32> to vector<8x128xbf16>
    %cst_64 = arith.constant dense<0.000000e+00> : vector<8x384xf32>
    %178 = tpu.matmul %177, %162, %cst_64 {dimension_numbers = #tpu.dot_dimension_numbers<[1], [0], [0], [1], [0, 0, 1, 1], [], []>} : vector<8x128xbf16>, vector<128x384xbf16>, vector<8x384xf32> -> vector<8x384xf32>
    %179 = vector.extract_strided_slice %176 {offsets = [0, 0], sizes = [8, 128], strides = [1, 1]} : vector<8x384xf32> to vector<8x128xf32>
    %180 = vector.extract_strided_slice %178 {offsets = [0, 0], sizes = [8, 128], strides = [1, 1]} : vector<8x384xf32> to vector<8x128xf32>
    %181 = arith.addf %179, %180 : vector<8x128xf32>
    %182 = arith.negf %181 : vector<8x128xf32>
    %183 = math.exp %182 : vector<8x128xf32>
    %cst_65 = arith.constant 1.000000e+00 : f32
    %184 = vector.broadcast %cst_65 : f32 to vector<8x128xf32>
    %185 = arith.addf %184, %183 : vector<8x128xf32>
    %186 = arith.divf %184, %185 : vector<8x128xf32>
    %187 = vector.extract_strided_slice %176 {offsets = [0, 128], sizes = [8, 128], strides = [1, 1]} : vector<8x384xf32> to vector<8x128xf32>
    %188 = vector.extract_strided_slice %178 {offsets = [0, 128], sizes = [8, 128], strides = [1, 1]} : vector<8x384xf32> to vector<8x128xf32>
    %189 = arith.addf %187, %188 : vector<8x128xf32>
    %190 = arith.negf %189 : vector<8x128xf32>
    %191 = math.exp %190 : vector<8x128xf32>
    %cst_66 = arith.constant 1.000000e+00 : f32
    %192 = vector.broadcast %cst_66 : f32 to vector<8x128xf32>
    %193 = arith.addf %192, %191 : vector<8x128xf32>
    %194 = arith.divf %192, %193 : vector<8x128xf32>
    %195 = vector.extract_strided_slice %176 {offsets = [0, 256], sizes = [8, 128], strides = [1, 1]} : vector<8x384xf32> to vector<8x128xf32>
    %196 = vector.extract_strided_slice %178 {offsets = [0, 256], sizes = [8, 128], strides = [1, 1]} : vector<8x384xf32> to vector<8x128xf32>
    %197 = vector.broadcast %164 : vector<1x128xf32> to vector<8x128xf32>
    %198 = arith.addf %196, %197 : vector<8x128xf32>
    %199 = arith.mulf %186, %198 : vector<8x128xf32>
    %200 = arith.addf %195, %199 : vector<8x128xf32>
    %201 = math.tanh %200 : vector<8x128xf32>
    %cst_67 = arith.constant 1.000000e+00 : f32
    %202 = vector.broadcast %cst_67 : f32 to vector<8x128xf32>
    %203 = arith.subf %202, %194 : vector<8x128xf32>
    %204 = arith.mulf %203, %201 : vector<8x128xf32>
    %205 = arith.mulf %194, %172 : vector<8x128xf32>
    %206 = arith.addf %204, %205 : vector<8x128xf32>
    %207 = arith.index_cast %174 : i32 to index
    %c0_68 = arith.constant 0 : index
    %208 = vector.load %arg16[%207, %c0_68] : memref<32x128xf32, #tpu.memory_space<vmem>>, vector<8x128xf32>
    tpu.vector_store %arg16[%207, %c0_68], %206 {strides = array<i32>} : memref<32x128xf32, #tpu.memory_space<vmem>>, vector<8x128xf32>,
    %c1_i32_69 = arith.constant 1 : i32
    %c8_i32_70 = arith.constant 8 : i32
    %209 = arith.muli %c1_i32_69, %c8_i32_70 : i32
    %210 = tpu.assume_multiple %209, 8 : i32
    %211 = arith.index_cast %210 : i32 to index
    %c0_71 = arith.constant 0 : index
    %212 = vector.load %arg14[%211, %c0_71] : memref<32x384xf32, #tpu.memory_space<vmem>>, vector<8x384xf32>
    %213 = arith.truncf %206 : vector<8x128xf32> to vector<8x128xbf16>
    %cst_72 = arith.constant dense<0.000000e+00> : vector<8x384xf32>
    %214 = tpu.matmul %213, %162, %cst_72 {dimension_numbers = #tpu.dot_dimension_numbers<[1], [0], [0], [1], [0, 0, 1, 1], [], []>} : vector<8x128xbf16>, vector<128x384xbf16>, vector<8x384xf32> -> vector<8x384xf32>
    %215 = vector.extract_strided_slice %212 {offsets = [0, 0], sizes = [8, 128], strides = [1, 1]} : vector<8x384xf32> to vector<8x128xf32>
    %216 = vector.extract_strided_slice %214 {offsets = [0, 0], sizes = [8, 128], strides = [1, 1]} : vector<8x384xf32> to vector<8x128xf32>
    %217 = arith.addf %215, %216 : vector<8x128xf32>
    %218 = arith.negf %217 : vector<8x128xf32>
    %219 = math.exp %218 : vector<8x128xf32>
    %cst_73 = arith.constant 1.000000e+00 : f32
    %220 = vector.broadcast %cst_73 : f32 to vector<8x128xf32>
    %221 = arith.addf %220, %219 : vector<8x128xf32>
    %222 = arith.divf %220, %221 : vector<8x128xf32>
    %223 = vector.extract_strided_slice %212 {offsets = [0, 128], sizes = [8, 128], strides = [1, 1]} : vector<8x384xf32> to vector<8x128xf32>
    %224 = vector.extract_strided_slice %214 {offsets = [0, 128], sizes = [8, 128], strides = [1, 1]} : vector<8x384xf32> to vector<8x128xf32>
    %225 = arith.addf %223, %224 : vector<8x128xf32>
    %226 = arith.negf %225 : vector<8x128xf32>
    %227 = math.exp %226 : vector<8x128xf32>
    %cst_74 = arith.constant 1.000000e+00 : f32
    %228 = vector.broadcast %cst_74 : f32 to vector<8x128xf32>
    %229 = arith.addf %228, %227 : vector<8x128xf32>
    %230 = arith.divf %228, %229 : vector<8x128xf32>
    %231 = vector.extract_strided_slice %212 {offsets = [0, 256], sizes = [8, 128], strides = [1, 1]} : vector<8x384xf32> to vector<8x128xf32>
    %232 = vector.extract_strided_slice %214 {offsets = [0, 256], sizes = [8, 128], strides = [1, 1]} : vector<8x384xf32> to vector<8x128xf32>
    %233 = vector.broadcast %164 : vector<1x128xf32> to vector<8x128xf32>
    %234 = arith.addf %232, %233 : vector<8x128xf32>
    %235 = arith.mulf %222, %234 : vector<8x128xf32>
    %236 = arith.addf %231, %235 : vector<8x128xf32>
    %237 = math.tanh %236 : vector<8x128xf32>
    %cst_75 = arith.constant 1.000000e+00 : f32
    %238 = vector.broadcast %cst_75 : f32 to vector<8x128xf32>
    %239 = arith.subf %238, %230 : vector<8x128xf32>
    %240 = arith.mulf %239, %237 : vector<8x128xf32>
    %241 = arith.mulf %230, %206 : vector<8x128xf32>
    %242 = arith.addf %240, %241 : vector<8x128xf32>
    %243 = arith.index_cast %210 : i32 to index
    %c0_76 = arith.constant 0 : index
    %244 = vector.load %arg16[%243, %c0_76] : memref<32x128xf32, #tpu.memory_space<vmem>>, vector<8x128xf32>
    tpu.vector_store %arg16[%243, %c0_76], %242 {strides = array<i32>} : memref<32x128xf32, #tpu.memory_space<vmem>>, vector<8x128xf32>,
    %c2_i32_77 = arith.constant 2 : i32
    %c8_i32_78 = arith.constant 8 : i32
    %245 = arith.muli %c2_i32_77, %c8_i32_78 : i32
    %246 = tpu.assume_multiple %245, 8 : i32
    %247 = arith.index_cast %246 : i32 to index
    %c0_79 = arith.constant 0 : index
    %248 = vector.load %arg14[%247, %c0_79] : memref<32x384xf32, #tpu.memory_space<vmem>>, vector<8x384xf32>
    %249 = arith.truncf %242 : vector<8x128xf32> to vector<8x128xbf16>
    %cst_80 = arith.constant dense<0.000000e+00> : vector<8x384xf32>
    %250 = tpu.matmul %249, %162, %cst_80 {dimension_numbers = #tpu.dot_dimension_numbers<[1], [0], [0], [1], [0, 0, 1, 1], [], []>} : vector<8x128xbf16>, vector<128x384xbf16>, vector<8x384xf32> -> vector<8x384xf32>
    %251 = vector.extract_strided_slice %248 {offsets = [0, 0], sizes = [8, 128], strides = [1, 1]} : vector<8x384xf32> to vector<8x128xf32>
    %252 = vector.extract_strided_slice %250 {offsets = [0, 0], sizes = [8, 128], strides = [1, 1]} : vector<8x384xf32> to vector<8x128xf32>
    %253 = arith.addf %251, %252 : vector<8x128xf32>
    %254 = arith.negf %253 : vector<8x128xf32>
    %255 = math.exp %254 : vector<8x128xf32>
    %cst_81 = arith.constant 1.000000e+00 : f32
    %256 = vector.broadcast %cst_81 : f32 to vector<8x128xf32>
    %257 = arith.addf %256, %255 : vector<8x128xf32>
    %258 = arith.divf %256, %257 : vector<8x128xf32>
    %259 = vector.extract_strided_slice %248 {offsets = [0, 128], sizes = [8, 128], strides = [1, 1]} : vector<8x384xf32> to vector<8x128xf32>
    %260 = vector.extract_strided_slice %250 {offsets = [0, 128], sizes = [8, 128], strides = [1, 1]} : vector<8x384xf32> to vector<8x128xf32>
    %261 = arith.addf %259, %260 : vector<8x128xf32>
    %262 = arith.negf %261 : vector<8x128xf32>
    %263 = math.exp %262 : vector<8x128xf32>
    %cst_82 = arith.constant 1.000000e+00 : f32
    %264 = vector.broadcast %cst_82 : f32 to vector<8x128xf32>
    %265 = arith.addf %264, %263 : vector<8x128xf32>
    %266 = arith.divf %264, %265 : vector<8x128xf32>
    %267 = vector.extract_strided_slice %248 {offsets = [0, 256], sizes = [8, 128], strides = [1, 1]} : vector<8x384xf32> to vector<8x128xf32>
    %268 = vector.extract_strided_slice %250 {offsets = [0, 256], sizes = [8, 128], strides = [1, 1]} : vector<8x384xf32> to vector<8x128xf32>
    %269 = vector.broadcast %164 : vector<1x128xf32> to vector<8x128xf32>
    %270 = arith.addf %268, %269 : vector<8x128xf32>
    %271 = arith.mulf %258, %270 : vector<8x128xf32>
    %272 = arith.addf %267, %271 : vector<8x128xf32>
    %273 = math.tanh %272 : vector<8x128xf32>
    %cst_83 = arith.constant 1.000000e+00 : f32
    %274 = vector.broadcast %cst_83 : f32 to vector<8x128xf32>
    %275 = arith.subf %274, %266 : vector<8x128xf32>
    %276 = arith.mulf %275, %273 : vector<8x128xf32>
    %277 = arith.mulf %266, %242 : vector<8x128xf32>
    %278 = arith.addf %276, %277 : vector<8x128xf32>
    %279 = arith.index_cast %246 : i32 to index
    %c0_84 = arith.constant 0 : index
    %280 = vector.load %arg16[%279, %c0_84] : memref<32x128xf32, #tpu.memory_space<vmem>>, vector<8x128xf32>
    tpu.vector_store %arg16[%279, %c0_84], %278 {strides = array<i32>} : memref<32x128xf32, #tpu.memory_space<vmem>>, vector<8x128xf32>,
    %c3_i32_85 = arith.constant 3 : i32
    %c8_i32_86 = arith.constant 8 : i32
    %281 = arith.muli %c3_i32_85, %c8_i32_86 : i32
    %282 = tpu.assume_multiple %281, 8 : i32
    %283 = arith.index_cast %282 : i32 to index
    %c0_87 = arith.constant 0 : index
    %284 = vector.load %arg14[%283, %c0_87] : memref<32x384xf32, #tpu.memory_space<vmem>>, vector<8x384xf32>
    %285 = arith.truncf %278 : vector<8x128xf32> to vector<8x128xbf16>
    %cst_88 = arith.constant dense<0.000000e+00> : vector<8x384xf32>
    %286 = tpu.matmul %285, %162, %cst_88 {dimension_numbers = #tpu.dot_dimension_numbers<[1], [0], [0], [1], [0, 0, 1, 1], [], []>} : vector<8x128xbf16>, vector<128x384xbf16>, vector<8x384xf32> -> vector<8x384xf32>
    %287 = vector.extract_strided_slice %284 {offsets = [0, 0], sizes = [8, 128], strides = [1, 1]} : vector<8x384xf32> to vector<8x128xf32>
    %288 = vector.extract_strided_slice %286 {offsets = [0, 0], sizes = [8, 128], strides = [1, 1]} : vector<8x384xf32> to vector<8x128xf32>
    %289 = arith.addf %287, %288 : vector<8x128xf32>
    %290 = arith.negf %289 : vector<8x128xf32>
    %291 = math.exp %290 : vector<8x128xf32>
    %cst_89 = arith.constant 1.000000e+00 : f32
    %292 = vector.broadcast %cst_89 : f32 to vector<8x128xf32>
    %293 = arith.addf %292, %291 : vector<8x128xf32>
    %294 = arith.divf %292, %293 : vector<8x128xf32>
    %295 = vector.extract_strided_slice %284 {offsets = [0, 128], sizes = [8, 128], strides = [1, 1]} : vector<8x384xf32> to vector<8x128xf32>
    %296 = vector.extract_strided_slice %286 {offsets = [0, 128], sizes = [8, 128], strides = [1, 1]} : vector<8x384xf32> to vector<8x128xf32>
    %297 = arith.addf %295, %296 : vector<8x128xf32>
    %298 = arith.negf %297 : vector<8x128xf32>
    %299 = math.exp %298 : vector<8x128xf32>
    %cst_90 = arith.constant 1.000000e+00 : f32
    %300 = vector.broadcast %cst_90 : f32 to vector<8x128xf32>
    %301 = arith.addf %300, %299 : vector<8x128xf32>
    %302 = arith.divf %300, %301 : vector<8x128xf32>
    %303 = vector.extract_strided_slice %284 {offsets = [0, 256], sizes = [8, 128], strides = [1, 1]} : vector<8x384xf32> to vector<8x128xf32>
    %304 = vector.extract_strided_slice %286 {offsets = [0, 256], sizes = [8, 128], strides = [1, 1]} : vector<8x384xf32> to vector<8x128xf32>
    %305 = vector.broadcast %164 : vector<1x128xf32> to vector<8x128xf32>
    %306 = arith.addf %304, %305 : vector<8x128xf32>
    %307 = arith.mulf %294, %306 : vector<8x128xf32>
    %308 = arith.addf %303, %307 : vector<8x128xf32>
    %309 = math.tanh %308 : vector<8x128xf32>
    %cst_91 = arith.constant 1.000000e+00 : f32
    %310 = vector.broadcast %cst_91 : f32 to vector<8x128xf32>
    %311 = arith.subf %310, %302 : vector<8x128xf32>
    %312 = arith.mulf %311, %309 : vector<8x128xf32>
    %313 = arith.mulf %302, %278 : vector<8x128xf32>
    %314 = arith.addf %312, %313 : vector<8x128xf32>
    %315 = arith.index_cast %282 : i32 to index
    %c0_92 = arith.constant 0 : index
    %316 = vector.load %arg16[%315, %c0_92] : memref<32x128xf32, #tpu.memory_space<vmem>>, vector<8x128xf32>
    tpu.vector_store %arg16[%315, %c0_92], %314 {strides = array<i32>} : memref<32x128xf32, #tpu.memory_space<vmem>>, vector<8x128xf32>,
    %c4_i32_93 = arith.constant 4 : i32
    %c1_94 = arith.constant 1 : index
    %c0_95 = arith.constant 0 : index
    %c0_96 = arith.constant 0 : index
    %317 = vector.load %arg17[%c1_94, %c0_95, %c0_96] : memref<2x8x128xf32, #tpu.memory_space<vmem>>, vector<1x8x128xf32>
    %318 = vector.shape_cast %317 : vector<1x8x128xf32> to vector<8x128xf32>
    %319 = vector.shape_cast %314 : vector<8x128xf32> to vector<1x8x128xf32>
    tpu.vector_store %arg17[%c1_94, %c0_95, %c0_96], %319 {strides = array<i32>} : memref<2x8x128xf32, #tpu.memory_space<vmem>>, vector<1x8x128xf32>,
    %c0_97 = arith.constant 0 : index
    %c0_98 = arith.constant 0 : index
    %320 = vector.load %arg16[%c0_97, %c0_98] : memref<32x128xf32, #tpu.memory_space<vmem>>, vector<32x128xf32>
    %321 = arith.truncf %320 : vector<32x128xf32> to vector<32x128xbf16>
    %c0_99 = arith.constant 0 : index
    %c0_100 = arith.constant 0 : index
    %322 = vector.load %arg11[%c0_99, %c0_100] : memref<128x128xbf16, #tpu.memory_space<vmem>>, vector<128x128xbf16>
    %cst_101 = arith.constant dense<0.000000e+00> : vector<32x128xf32>
    %323 = tpu.matmul %321, %322, %cst_101 {dimension_numbers = #tpu.dot_dimension_numbers<[1], [0], [0], [1], [0, 0, 1, 1], [], []>} : vector<32x128xbf16>, vector<128x128xbf16>, vector<32x128xf32> -> vector<32x128xf32>
    %c0_102 = arith.constant 0 : index
    %c0_103 = arith.constant 0 : index
    %324 = vector.load %arg12[%c0_102, %c0_103] : memref<1x128xf32, #tpu.memory_space<vmem>>, vector<1x128xf32>
    %325 = vector.broadcast %324 : vector<1x128xf32> to vector<32x128xf32>
    %326 = arith.addf %323, %325 : vector<32x128xf32>
    %c0_104 = arith.constant 0 : index
    %c0_105 = arith.constant 0 : index
    %327 = vector.load %arg13[%c0_104, %c0_105] : memref<32x128xf32, #tpu.memory_space<vmem>>, vector<32x128xf32>
    tpu.vector_store %arg13[%c0_104, %c0_105], %326 {strides = array<i32>} : memref<32x128xf32, #tpu.memory_space<vmem>>, vector<32x128xf32>,
    return
  }
  func.func @transform_0(%arg0: i32, %arg1: i32) -> (i32, i32) {
    %c2_i32 = arith.constant 2 : i32
    %0 = arith.muli %arg0, %c2_i32 : i32
    %1 = arith.addi %0, %arg1 : i32
    %c0_i32 = arith.constant 0 : i32
    %c0_i32_0 = arith.constant 0 : i32
    return %1, %c0_i32 : i32, i32
  }
  func.func @transform_1(%arg0: i32, %arg1: i32) -> (i32, i32) {
    %c0_i32 = arith.constant 0 : i32
    %c0_i32_0 = arith.constant 0 : i32
    %c0_i32_1 = arith.constant 0 : i32
    return %c0_i32, %c0_i32_0 : i32, i32
  }
  func.func @transform_2(%arg0: i32, %arg1: i32) -> (i32, i32) {
    %c0_i32 = arith.constant 0 : i32
    %c0_i32_0 = arith.constant 0 : i32
    %c0_i32_1 = arith.constant 0 : i32
    return %c0_i32, %c0_i32_0 : i32, i32
  }
  func.func @transform_3(%arg0: i32, %arg1: i32) -> (i32, i32) {
    %c0_i32 = arith.constant 0 : i32
    %c0_i32_0 = arith.constant 0 : i32
    %c0_i32_1 = arith.constant 0 : i32
    return %c0_i32, %c0_i32_0 : i32, i32
  }
  func.func @transform_4(%arg0: i32, %arg1: i32) -> (i32, i32) {
    %c0_i32 = arith.constant 0 : i32
    %c0_i32_0 = arith.constant 0 : i32
    %c0_i32_1 = arith.constant 0 : i32
    return %c0_i32, %c0_i32_0 : i32, i32
  }
  func.func @transform_5(%arg0: i32, %arg1: i32) -> (i32, i32) {
    %c0_i32 = arith.constant 0 : i32
    %c0_i32_0 = arith.constant 0 : i32
    %c0_i32_1 = arith.constant 0 : i32
    return %c0_i32, %c0_i32_0 : i32, i32
  }
  func.func @transform_6(%arg0: i32, %arg1: i32) -> (i32, i32) {
    %c0_i32 = arith.constant 0 : i32
    %c0_i32_0 = arith.constant 0 : i32
    %c0_i32_1 = arith.constant 0 : i32
    return %c0_i32, %c0_i32_0 : i32, i32
  }
  func.func @transform_7(%arg0: i32, %arg1: i32) -> (i32, i32) {
    %c0_i32 = arith.constant 0 : i32
    %c0_i32_0 = arith.constant 0 : i32
    %c0_i32_1 = arith.constant 0 : i32
    return %c0_i32, %c0_i32_0 : i32, i32
  }
  func.func @transform_8(%arg0: i32, %arg1: i32) -> (i32, i32) {
    %c0_i32 = arith.constant 0 : i32
    %c0_i32_0 = arith.constant 0 : i32
    %c0_i32_1 = arith.constant 0 : i32
    return %c0_i32, %c0_i32_0 : i32, i32
  }
  func.func @transform_9(%arg0: i32, %arg1: i32) -> (i32, i32) {
    %c0_i32 = arith.constant 0 : i32
    %c0_i32_0 = arith.constant 0 : i32
    %c0_i32_1 = arith.constant 0 : i32
    return %c0_i32, %c0_i32_0 : i32, i32
  }
  func.func @transform_10(%arg0: i32, %arg1: i32) -> (i32, i32) {
    %c0_i32 = arith.constant 0 : i32
    %c0_i32_0 = arith.constant 0 : i32
    %c0_i32_1 = arith.constant 0 : i32
    return %c0_i32, %c0_i32_0 : i32, i32
  }
  func.func @transform_11(%arg0: i32, %arg1: i32) -> (i32, i32) {
    %c2_i32 = arith.constant 2 : i32
    %0 = arith.muli %arg0, %c2_i32 : i32
    %1 = arith.addi %0, %arg1 : i32
    %c0_i32 = arith.constant 0 : i32
    %c0_i32_0 = arith.constant 0 : i32
    return %1, %c0_i32 : i32, i32
  }
}

</mosaic_0001>

<bundles_post_ra>
// kernel: tpu_custom_call.1
= control target key start
LH: loop header
LB: loop body
LE: loop exit
PB: predicated region body
PF: predicated region fallthrough
CT: control target
= control target key end

     0   :  { %s3763_s0 = inlined_call_operand.vmem [shape: bf16[64,8], index: 0, kind: input, shape index: {}]   ;;  %s3764_s1 = inlined_call_operand.vmem [shape: bf16[8,384], index: 1, kind: input, shape index: {}]   ;;  %s3765_s2 = inlined_call_operand.hbm [shape: bf16[128,384], index: 2, kind: input, shape index: {}]   ;;  %s3766_s3 = inlined_call_operand.vmem [shape: f32[1,384], index: 3, kind: input, shape index: {}]   ;;  %s3767_s4 = inlined_call_operand.vmem [shape: f32[1,128], index: 4, kind: input, shape index: {}]   ;;  %s3768_s5 = inlined_call_operand.hbm [shape: bf16[128,384], index: 5, kind: input, shape index: {}]   ;;  %s3769_s6 = inlined_call_operand.hbm [shape: bf16[128,384], index: 6, kind: input, shape index: {}]   ;;  %s3770_s7 = inlined_call_operand.vmem [shape: f32[1,384], index: 7, kind: input, shape index: {}]   ;;  %s3771_s8 = inlined_call_operand.vmem [shape: f32[1,128], index: 8, kind: input, shape index: {}]   ;;  %s3772_s9 = inlined_call_operand.hbm [shape: bf16[128,128], index: 9, kind: input, shape index: {}]   ;;  %s3773_s10 = inlined_call_operand.vmem [shape: f32[1,128], index: 10, kind: input, shape index: {}]   ;;  %s3774_s11 = inlined_call_operand.hbm [shape: f32[64,128], index: 11, kind: output, shape index: {}]  }
   0x1   :  { %3783 = sst [smem:[#allocation26_spill]] %s3765_s2 }
   0x2   :  { %3784 = sst [smem:[#allocation27_spill]] %s3768_s5 }
   0x3   :  { %3785 = sst [smem:[#allocation28_spill]] %s3774_s11 }
   0x4   :  { %16 = vsyncpa [#allocation7], 0 }
   0x5   :  { %17 = vsyncpa [#allocation10], 0 }
   0x6   :  { %18 = vsyncpa [#allocation13], 0 }
   0x7   :  { %19 = vsyncpa [#allocation8], 0 }
   0x8   :  { %21 = vsyncpa [#allocation8 + $0x1], 0  ;;  %s3097_s17 = smov 0   ;;  %s3099_s18 = smov 0  }
   0x9   :  { %s3101_s19 = smov 0   ;;  %s3103_s20 = smov 0  }
   0xa   :  { %s3105_s21 = smov 0   ;;  %s3107_s22 = smov 0  }
   0xb LB: > { %3786 = sst [smem:[#allocation19_spill]] %s3004_s17  ;;  %s2173_s23 = sadd.s32 4294967295, %s3024_s22   ;;  %s3024_s22 = sphi %s3107_s22, %s27_s22   ;;  %s3020_s21 = sphi %s3105_s21, %s3807_s21   ;;  %s3016_s20 = sphi %s3103_s20, %s3806_s20   ;;  %s3012_s19 = sphi %s3101_s19, %s3805_s19   ;;  %s3008_s18 = sphi %s3099_s18, %s3809_s18   ;;  %s3004_s17 = sphi %s3097_s17, %s3808_s17  }
   0xc   : > { %3787 = sst [smem:[#allocation20_spill]] %s3012_s19  ;;  %s2174_s24 = sadd.s32 4294967294, %s3024_s22  }
   0xd   : > { %3788 = sst [smem:[#allocation21_spill]] %s3020_s21  ;;  %s36_s25 = sadd.s32 1, %s3020_s21 }
   0xe   : > { %3789 = sst [smem:[#allocation22_spill]] %s3024_s22  ;;  %s290_s26 = sadd.s32 1, %s3012_s19 }
   0xf   : > { %p37_p0 = scmp.ge.s32.totalorder %s36_s25, 2  ;;  %p300_p1 = scmp.ne.s32.totalorder %s3012_s19, %s3008_s18 }
  0x10   : > { %p301_p2 = scmp.eq.s32.totalorder %s2173_s23, 1  ;;  %p306_p3 = scmp.ne.s32.totalorder %s3008_s18, %s3004_s17 }
  0x11   : > { %s3811_s25 = smov (%p37_p0, %s36_s25), 0  ;;  %p307_p5 = scmp.eq.s32.totalorder %s2174_s24, 1 }
  0x12   : > { %3790 = sst [smem:[#allocation23_spill]] %s3811_s25  ;;  %p3137_p4 = por %p301_p2, %p300_p1 }
  0x13   : > { %s287_s28 = ssub.s32 %s3020_s21, %s3811_s25  ;;  %p2175_p6 = scmp.ge.s32.totalorder %s3024_s22, 1 }
  0x14   : > { %p288_p7 = scmp.eq.s32.totalorder %s287_s28, 0  ;;  %p3144_p8 = por %p307_p5, %p306_p3 }
  0x15   : > { %p314_p9 = scmp.lt.s32.totalorder %s3024_s22, 3  ;;  %p3156_p11 = scmp.eq.s32.totalorder %s2173_s23, 0 }
  0x16   : > { %s3792_s29 = scalar_select %p3144_p8, 1, 0 }
  0x17   : > { %s3150_s30 = scalar_select %p288_p7, %s3012_s19, %s290_s26  }
  0x18   : > { %3793 = sst [smem:[#allocation24_spill]] %s3792_s29  ;;  %p3152_p10 = pnand %p2175_p6, %p314_p9 }
  0x19   : > { %3794 = sst [smem:[#allocation25_spill]] %s3150_s30  ;;  %s3026_s26 = smov [#allocation9]  }
  0x1a   : > { %p2646_p12 = pneg %p3152_p10  ;;  %s3797_s5 = sld [smem:[#allocation27_spill]] }
  0x1b   : > { %s350_s23 = sshll.u32 %s3026_s26, 4  ;;  %s3027_s28 = smov 192   ;;  %s351_s23 = int_to_ptr.vmem [resolvable:$true] %s350_s23 }
  0x1c   : > { %p3167_p13 = pnand %p3156_p11, %p2646_p12  ;;  %s3028_s25 = smov 12  }
  0x1d   : > { %s3799_s2 = sld [smem:[#allocation26_spill]]  ;;  %s3029_s15 = smov [#allocation6]  }
  0x1e   : > { %s362_s17 = sshll.u32 %s3769_s6, 4  ;;  %s3030_s26 = smov [#allocation11]   ;;  %s363_s17 = int_to_ptr.hbm [resolvable:$true] %s362_s17 }
  0x1f   : > { %s364_s22 = sshll.u32 %s3030_s26, 4  ;;  %s3031_s21 = smov [#allocation12]   ;;  %s365_s22 = int_to_ptr.vmem [resolvable:$true] %s364_s22 }
  0x20   : > { %s348_s16 = sshll.u32 %s3797_s5, 4  ;;  %s330_s5 = sshll.u32 %s3029_s15, 4  ;;  %s349_s16 = int_to_ptr.hbm [resolvable:$true] %s348_s16  ;;  %s331_s5 = int_to_ptr.vmem [resolvable:$true] %s330_s5 }
  0x21   : > { %2652 = dma.hbm_to_vmem [thread:$0]  (!%p3167_p13), %s349_s16, 3072, %s351_s23, [#allocation10], %s3027_s28, %s3027_s28, %s3028_s25  }
  0x22   : > { %s382_s23 = sshll.u32 %s3772_s9, 4  ;;  %s384_s30 = sshll.u32 %s3031_s21, 4  ;;  %s383_s23 = int_to_ptr.hbm [resolvable:$true] %s382_s23  ;;  %s385_s30 = int_to_ptr.vmem [resolvable:$true] %s384_s30 }
  0x23   : > { %s328_s14 = sshll.u32 %s3799_s2, 4  ;;  %s3032_s15 = smov 64   ;;  %s329_s14 = int_to_ptr.hbm [resolvable:$true] %s328_s14 }
  0x24   : > { %2649 = dma.hbm_to_vmem [thread:$0]  (!%p3167_p13), %s329_s14, 3072, %s331_s5, [#allocation7], %s3027_s28, %s3027_s28, %s3028_s25  }
  0x25   : > { %2655 = dma.hbm_to_vmem [thread:$0]  (!%p3167_p13), %s363_s17, 3072, %s365_s22, [#allocation10], %s3027_s28, %s3027_s28, %s3028_s25  }
  0x26   : > { %s3033_s2 = smov 4   ;;  %416 = sbr.rel (%p3152_p10) target bundleno = 1662 (0x67e), region = 64 }
  0x27   : > { %2658 = dma.hbm_to_vmem [thread:$0]  (!%p3167_p13), %s383_s23, 1024, %s385_s30, [#allocation13], %s3032_s15, %s3032_s15, %s3033_s2  }
  0x2b   : > { %2987 = dma.done.wait (%p3156_p11), [#allocation7], 3072  }
  0x2c   : > { %2989 = vsyncadd (%p3156_p11), [#allocation7], 4294964224 }
  0x2d   : > { %2991 = dma.done.wait (%p3156_p11), [#allocation10], 6144  }
  0x2e   : > { %2993 = vsyncadd (%p3156_p11), [#allocation10], 4294961152 }
  0x2f   : > { %2995 = dma.done.wait (%p3156_p11), [#allocation13], 1024  }
  0x30   : > { %2997 = vsyncadd (%p3156_p11), [#allocation13], 4294966272  ;;  %s471_s2 = sand.u32 1, %s3008_s18   ;;  %s2187_s5 = sshll.u32 %s3016_s20, 2 }
  0x31   : > { %s2186_s11 = sshll.u32 %s471_s2, 5  ;;  %p477_p0 = scmp.lt.s32.totalorder %s2187_s5, 7 }
  0x32   : > { %s3211_s29 = scalar_lea.vmem [#allocation14], %s2186_s11  ;;  %p2189_p1 = scmp.ne.s32.totalorder %s3016_s20, 0 }
  0x33   : > { %s3813_s5 = smov (!%p477_p0, %s2187_s5), 7 }
  0x34   : > { %s2188_s17 = sshll.u32 %s3813_s5, 2  ;;  %491 = sbr.rel (%p2189_p1) target bundleno = 60 (0x3c), region = 84 }
  0x35   : > { %s3209_s25 = scalar_lea.vmem %s3763_s0, %s2188_s17 }
  0x39   : > { %v3034_v0 = vmov 0.0  }
  0x3a   : > { %492 = vst [vmem:[#allocation5] sm:$0xff] %v3034_v0 }
  0x3b   : > { %493 = vst [vmem:[#allocation5 + $0x8] sm:$0xff] %v3034_v0 }
  0x3c PF: > { %v494_v1 = vld [vmem:[%s3764_s1] sm:$0xff]  ;;  %v495_v2 = vld [vmem:[%s3764_s1 + $0x8] sm:$0xf]  ;;  %v2290_v5 = vld [vmem:[#allocation6 + $0xa8] sm:$0xf]  ;;  %vm566_vm0 = vcmask 1043456  }
  0x3d   : > { %v553_v3 = vunpack.c.l.b16 %v494_v1  ;;  %v555_v4 = vunpack.c.l.b16 %v495_v2  ;;  %v2567_v6 = vld [vmem:[#allocation6 + $0xb0] sm:$0xf0]  ;;  %v2566_v7 = vld [vmem:[#allocation6 + $0xac] sm:$0xf]  ;;  %v554_v8 = vunpack.c.h.b16 %v494_v1  ;;  %v2292_v10 = vld [vmem:[#allocation6 + $0xb4] sm:$0xf0] }
  0x3e   : > { %v3220_v9 = vor.u32 %v2567_v6, %v2290_v5  ;;  %v3222_v13 = vor.u32 %v2566_v7, %v2292_v10  ;;  %v2278_v14 = vld [vmem:[#allocation6 + $0x90] sm:$0xf]  ;;  %v2564_v15 = vld [vmem:[#allocation6 + $0x98] sm:$0xf0]  ;;  %v2563_v16 = vld [vmem:[#allocation6 + $0x94] sm:$0xf] }
  0x3f   : > { %v556_v11 = vpack.c.b16 %v553_v3, %v553_v3  ;;  %v558_v12 = vpack.c.b16 %v555_v4, %v555_v4  ;;  %v2280_v17 = vld [vmem:[#allocation6 + $0x9c] sm:$0xf0]  ;;  %v557_v18 = vpack.c.b16 %v554_v8, %v554_v8  ;;  %v2569_v21 = vld [vmem:[%s3209_s25] sm:$0xff]  ;;  %vm559_vm1 = vcmask 64512   ;;  %v2266_v25 = vld [vmem:[#allocation6 + $0x78] sm:$0xf] }
  0x40   : > { %879 = vmatpush.bf16.msra.mxu2 %v3220_v9  ;;  %v3228_v22 = vor.u32 %v2564_v15, %v2278_v14  ;;  %v3233_v24 = vor.u32 %v2563_v16, %v2280_v17  ;;  %v2561_v26 = vld [vmem:[#allocation6 + $0x80] sm:$0xf0]  ;;  %v2560_v27 = vld [vmem:[#allocation6 + $0x7c] sm:$0xf]  ;;  %v2268_v28 = vld [vmem:[#allocation6 + $0x84] sm:$0xf0] }
  0x41   : > { %v568_v19 = vsel %vm566_vm0, %v556_v11, 0  ;;  %v574_v20 = vsel %vm566_vm0, %v558_v12, 0  ;;  %v571_v23 = vsel %vm566_vm0, %v557_v18, 0  ;;  %v3238_v29 = vor.u32 %v2561_v26, %v2266_v25  ;;  %v2254_v30 = vld [vmem:[#allocation6 + $0x60] sm:$0xf]  ;;  %v2570_v58 = vld [vmem:[%s3209_s25 + $0x8] sm:$0xff] }
  0x42   : > { %583 = vmatpush.bf16.msra.mxu0 %v568_v19  ;;  %621 = vmatpush.bf16.msra.mxu3 %v574_v20  ;;  %v3242_v31 = vor.u32 %v2560_v27, %v2268_v28  ;;  %v2558_v32 = vld [vmem:[#allocation6 + $0x68] sm:$0xf0]  ;;  %v2298_v33 = vld [vmem:[#allocation6 + $0xb0] sm:$0xf]  ;;  %v2568_v34 = vld [vmem:[#allocation6 + $0xb8] sm:$0xf0] }
  0x43   : > { %602 = vmatpush.bf16.msra.mxu1 %v571_v23  ;;  %v2557_v35 = vld [vmem:[#allocation6 + $0x64] sm:$0xf]  ;;  %v2256_v36 = vld [vmem:[#allocation6 + $0x6c] sm:$0xf0]  ;;  %v3245_v37 = vor.u32 %v2568_v34, %v2298_v33  ;;  %v2286_v38 = vld [vmem:[#allocation6 + $0x98] sm:$0xf]  ;;  %v3248_v40 = vor.u32 %v2558_v32, %v2254_v30 }
  0x44   : > { %880 = vmatpush.bf16.msra.mxu2 %v3228_v22  ;;  %v2565_v39 = vld [vmem:[#allocation6 + $0xa0] sm:$0xf0]  ;;  %v2242_v41 = vld [vmem:[#allocation6 + $0x48] sm:$0xf]  ;;  %v3255_v43 = vor.u32 %v2557_v35, %v2256_v36  ;;  %v2555_v44 = vld [vmem:[#allocation6 + $0x50] sm:$0xf0] }
  0x45   : > { %2198 = vmatmul.msk.bf16.vlgmr.msra.gmra.mxu0 %vm559_vm1, %v2569_v21  ;;  %2202 = vmatmul.msk.bf16.vlgmr.msra.gmra.mxu3 %vm559_vm1, %v2569_v21  ;;  %v3251_v42 = vor.u32 %v2565_v39, %v2286_v38  ;;  %v2274_v45 = vld [vmem:[#allocation6 + $0x80] sm:$0xf]  ;;  %v2562_v46 = vld [vmem:[#allocation6 + $0x88] sm:$0xf0]  ;;  %v2244_v48 = vld [vmem:[#allocation6 + $0x54] sm:$0xf0]  ;;  %v3258_v50 = vor.u32 %v2555_v44, %v2242_v41 }
  0x46   : > { %781 = vmatpush.bf16.msrb.mxu3 %v3220_v9  ;;  %794 = vmatpush.bf16.msrb.mxu0 %v3222_v13  ;;  %v2554_v47 = vld [vmem:[#allocation6 + $0x4c] sm:$0xf]  ;;  %v2230_v49 = vld [vmem:[#allocation6 + $0x30] sm:$0xf]  ;;  %v2552_v51 = vld [vmem:[#allocation6 + $0x38] sm:$0xf0]  ;;  %v3261_v52 = vor.u32 %v2562_v46, %v2274_v45 }
  0x47   : > { %2200 = vmatmul.msk.bf16.vlgmr.msra.gmra.mxu1 %vm559_vm1, %v2569_v21  ;;  %v3265_v53 = vor.u32 %v2554_v47, %v2244_v48  ;;  %v2262_v54 = vld [vmem:[#allocation6 + $0x68] sm:$0xf]  ;;  %v2559_v55 = vld [vmem:[#allocation6 + $0x70] sm:$0xf0]  ;;  %v2232_v57 = vld [vmem:[#allocation6 + $0x3c] sm:$0xf0]  ;;  %v3269_v59 = vor.u32 %v2552_v51, %v2230_v49 }
  0x48   : > { %881 = vmatpush.bf16.msra.mxu2 %v3238_v29  ;;  %807 = vmatpush.bf16.msrb.mxu1 %v3245_v37  ;;  %v2551_v56 = vld [vmem:[#allocation6 + $0x34] sm:$0xf]  ;;  %v2218_v60 = vld [vmem:[#allocation6 + $0x18] sm:$0xf]  ;;  %v3272_v61 = vor.u32 %v2559_v55, %v2262_v54  ;;  %v2549_v63 = vld [vmem:[#allocation6 + $0x20] sm:$0xf0] }
  0x49   : > { %v3276_v62 = vor.u32 %v2551_v56, %v2232_v57  ;;  %v2250_v0 = vld [vmem:[#allocation6 + $0x50] sm:$0xf]  ;;  %v2556_v1 = vld [vmem:[#allocation6 + $0x58] sm:$0xf0]  ;;  %v2220_v3 = vld [vmem:[#allocation6 + $0x24] sm:$0xf0]  ;;  %v3281_v4 = vor.u32 %v2549_v63, %v2218_v60 }
  0x4a   : > { %782 = vmatpush.bf16.msrb.mxu3 %v3228_v22  ;;  %795 = vmatpush.bf16.msrb.mxu0 %v3233_v24  ;;  %v2548_v2 = vld [vmem:[#allocation6 + $0x1c] sm:$0xf]  ;;  %v2206_v5 = vld [vmem:[#allocation6] sm:$0xf]  ;;  %v3284_v6 = vor.u32 %v2556_v1, %v2250_v0  ;;  %v2546_v8 = vld [vmem:[#allocation6 + $0x8] sm:$0xf0] }
  0x4b   : > { %v3288_v7 = vor.u32 %v2548_v2, %v2220_v3  ;;  %v2238_v10 = vld [vmem:[#allocation6 + $0x38] sm:$0xf]  ;;  %v2553_v11 = vld [vmem:[#allocation6 + $0x40] sm:$0xf0]  ;;  %v2208_v14 = vld [vmem:[#allocation6 + $0xc] sm:$0xf0]  ;;  %v3292_v15 = vor.u32 %v2546_v8, %v2206_v5 }
  0x4c   : > { %882 = vmatpush.bf16.msra.mxu2 %v3248_v40  ;;  %808 = vmatpush.bf16.msrb.mxu1 %v3251_v42  ;;  %v2545_v12 = vld [vmem:[#allocation6 + $0x4] sm:$0xf]  ;;  %v3295_v16 = vor.u32 %v2553_v11, %v2238_v10  ;;  %v2226_v18 = vld [vmem:[#allocation6 + $0x20] sm:$0xf]  ;;  %v2550_v19 = vld [vmem:[#allocation6 + $0x28] sm:$0xf0] }
  0x4d   : > { %v3299_v17 = vor.u32 %v2545_v12, %v2208_v14  ;;  %v3303_v20 = vld [vmem:[#allocation5] sm:$0xff]  ;;  %v3306_v21 = vor.u32 %v2550_v19, %v2226_v18  ;;  %v2214_v23 = vld [vmem:[#allocation6 + $0x8] sm:$0xf]  ;;  %s2627_s19 = sshll.u32 %s3016_s20, 5  ;;  %s3800_s12 = sld [smem:[#allocation28_spill]] }
  0x4e   : > { %783 = vmatpush.bf16.msrb.mxu3 %v3238_v29  ;;  %796 = vmatpush.bf16.msrb.mxu0 %v3242_v31  ;;  %v2547_v25 = vld [vmem:[#allocation6 + $0x10] sm:$0xf0]  ;;  %v652_v26 = vpack.c.bf16 %v3303_v20, %v3303_v20  ;;  %v3397_v14 = vld [vmem:[%s3767_s4] ss:$0 sm:$0xff]  ;;  %s2054_s24 = sshll.u32 %s3211_s29, 4  ;;  %s2040_s14 = scalar_lea.sflag [#allocation8], %s471_s2  ;;  %s2055_s24 = int_to_ptr.vmem [resolvable:$true] %s2054_s24 }
  0x4f   : > { %v3316_v27 = vor.u32 %v2547_v25, %v2214_v23 }
  0x50   : > { %883 = vmatpush.bf16.msra.mxu2 %v3258_v50  ;;  %809 = vmatpush.bf16.msrb.mxu1 %v3261_v52 }
  0x52   : > { %784 = vmatpush.bf16.msrb.mxu3 %v3248_v40  ;;  %797 = vmatpush.bf16.msrb.mxu0 %v3255_v43 }
  0x53   : > { %s2053_s13 = scalar_lea.hbm %s3800_s12, %s2627_s19  ;;  %s2954_s21 = scalar_lea.hbm %s3800_s12, 64 }
  0x54   : > { %884 = vmatpush.bf16.msra.mxu2 %v3269_v59  ;;  %810 = vmatpush.bf16.msrb.mxu1 %v3272_v61  ;;  %s2056_s28 = sshll.u32 %s2053_s13, 4  ;;  %s2057_s28 = int_to_ptr.hbm [resolvable:$true] %s2056_s28 }
  0x55   : > { %2199 = vmatmul.msk.bf16.gmra.mxu0 %vm559_vm1, %v2570_v58  ;;  %2203 = vmatmul.msk.bf16.gmra.mxu3 %vm559_vm1, %v2570_v58  ;;  %s2948_s20 = sshra.s32 %s2057_s28, 4  ;;  %s2949_s20 = int_to_ptr.hbm [resolvable:$true] %s2948_s20 }
  0x56   : > { %785 = vmatpush.bf16.msrb.mxu3 %v3258_v50  ;;  %798 = vmatpush.bf16.msrb.mxu0 %v3265_v53  ;;  %s2950_s26 = scalar_lea.hbm %s2949_s20, 32  ;;  %p2955_p6 = scmp.lt.s32.totalorder %s2949_s20, %s3800_s12 }
  0x57   : > { %2201 = vmatmul.msk.bf16.gmra.mxu1 %vm559_vm1, %v2570_v58  ;;  %p2951_p2 = scmp.ne.s32.totalorder %s2949_s20, %s2950_s26  ;;  %p2956_p7 = scmp.lt.s32.totalorder %s2954_s21, %s2950_s26 }
  0x58   : > { %885 = vmatpush.bf16.msra.mxu2 %v3281_v4  ;;  %811 = vmatpush.bf16.msrb.mxu1 %v3284_v6 }
  0x59   : > { %p2952_p3 = pnand %p2951_p2, %p3137_p4  ;;  %p2957_p9 = por %p2956_p7, %p2955_p6 }
  0x5a   : > { %786 = vmatpush.bf16.msrb.mxu3 %v3269_v59  ;;  %799 = vmatpush.bf16.msrb.mxu0 %v3276_v62 }
  0x5b   : > { %p2953_p5 = pneg %p2952_p3 }
  0x5c   : > { %886 = vmatpush.bf16.msra.mxu2 %v3292_v15  ;;  %812 = vmatpush.bf16.msrb.mxu1 %v3295_v16 }
  0x5d   : > { %p2958_p10 = pnand %p2957_p9, %p2953_p5 }
  0x5e   : > { %787 = vmatpush.bf16.msrb.mxu3 %v3281_v4  ;;  %800 = vmatpush.bf16.msrb.mxu0 %v3288_v7 }
  0x60   : > { %988 = vmatpush.bf16.msrb.mxu2 %v3222_v13  ;;  %813 = vmatpush.bf16.msrb.mxu1 %v3306_v21 }
  0x62   : > { %788 = vmatpush.bf16.msrb.mxu3 %v3292_v15  ;;  %801 = vmatpush.bf16.msrb.mxu0 %v3299_v17 }
  0x64   : > { %989 = vmatpush.bf16.msrb.mxu2 %v3233_v24  ;;  %814 = vmatpush.bf16.msrb.mxu1 %v3316_v27 }
  0x65   : > { %789 = vmatmul.bf16.vlgmr.msrb.gmra.mxu3 %v652_v26  ;;  %802 = vmatmul.bf16.vlgmr.msrb.gmra.mxu0 %v652_v26 }
  0x66   : > { %892 = vmatpush.bf16.msra.mxu3 %v3222_v13  ;;  %905 = vmatpush.bf16.msra.mxu0 %v3245_v37 }
  0x67   : > { %815 = vmatmul.bf16.vlgmr.msrb.gmra.mxu1 %v652_v26 }
  0x68   : > { %990 = vmatpush.bf16.msrb.mxu2 %v3242_v31  ;;  %975 = vmatpush.bf16.msra.mxu1 %v3220_v9 }
  0x6a   : > { %893 = vmatpush.bf16.msra.mxu3 %v3233_v24  ;;  %906 = vmatpush.bf16.msra.mxu0 %v3251_v42 }
  0x6c   : > { %991 = vmatpush.bf16.msrb.mxu2 %v3255_v43  ;;  %976 = vmatpush.bf16.msra.mxu1 %v3228_v22 }
  0x6e   : > { %894 = vmatpush.bf16.msra.mxu3 %v3242_v31  ;;  %907 = vmatpush.bf16.msra.mxu0 %v3261_v52 }
  0x70   : > { %992 = vmatpush.bf16.msrb.mxu2 %v3265_v53  ;;  %977 = vmatpush.bf16.msra.mxu1 %v3238_v29 }
  0x72   : > { %895 = vmatpush.bf16.msra.mxu3 %v3255_v43  ;;  %908 = vmatpush.bf16.msra.mxu0 %v3272_v61 }
  0x74   : > { %993 = vmatpush.bf16.msrb.mxu2 %v3276_v62  ;;  %978 = vmatpush.bf16.msra.mxu1 %v3248_v40 }
  0x76   : > { %896 = vmatpush.bf16.msra.mxu3 %v3265_v53  ;;  %909 = vmatpush.bf16.msra.mxu0 %v3284_v6 }
  0x78   : > { %994 = vmatpush.bf16.msrb.mxu2 %v3288_v7  ;;  %979 = vmatpush.bf16.msra.mxu1 %v3258_v50 }
  0x7a   : > { %897 = vmatpush.bf16.msra.mxu3 %v3276_v62  ;;  %910 = vmatpush.bf16.msra.mxu0 %v3295_v16 }
  0x7c   : > { %995 = vmatpush.bf16.msrb.mxu2 %v3299_v17  ;;  %980 = vmatpush.bf16.msra.mxu1 %v3269_v59 }
  0x7e   : > { %898 = vmatpush.bf16.msra.mxu3 %v3288_v7  ;;  %911 = vmatpush.bf16.msra.mxu0 %v3306_v21 }
  0x80   : > { %981 = vmatpush.bf16.msra.mxu1 %v3281_v4 }
  0x82   : > { %899 = vmatpush.bf16.msra.mxu3 %v3299_v17  ;;  %912 = vmatpush.bf16.msra.mxu0 %v3316_v27 }
  0x84   : > { %982 = vmatpush.bf16.msra.mxu1 %v3292_v15 }
  0x86   : > { %1001 = vmatpush.bf16.msrb.mxu3 %v3245_v37  ;;  %1071 = vmatpush.bf16.msrb.mxu0 %v3220_v9 }
  0x88   : > { %1084 = vmatpush.bf16.msrb.mxu1 %v3222_v13 }
  0x8a   : > { %1002 = vmatpush.bf16.msrb.mxu3 %v3251_v42  ;;  %1072 = vmatpush.bf16.msrb.mxu0 %v3228_v22  ;;  %v528_v22 = vld [vmem:[%s3766_s3] sm:$0x7] }
  0x8b   : > { %v537_v34 = vperm.slane %v528_v22, 2 }
  0x8c   : > { %1085 = vmatpush.bf16.msrb.mxu1 %v3233_v24  ;;  %v535_v24 = vperm.slane %v528_v22, 0 }
  0x8e   : > { %1003 = vmatpush.bf16.msrb.mxu3 %v3261_v52  ;;  %1073 = vmatpush.bf16.msrb.mxu0 %v3238_v29 }
  0x90   : > { %1086 = vmatpush.bf16.msrb.mxu1 %v3242_v31  ;;  %v536_v31 = vperm.slane %v528_v22, 1 }
  0x92   : > { %1004 = vmatpush.bf16.msrb.mxu3 %v3272_v61  ;;  %1074 = vmatpush.bf16.msrb.mxu0 %v3248_v40 }
  0x94   : > { %1087 = vmatpush.bf16.msrb.mxu1 %v3255_v43 }
  0x96   : > { %1005 = vmatpush.bf16.msrb.mxu3 %v3284_v6  ;;  %1075 = vmatpush.bf16.msrb.mxu0 %v3258_v50 }
  0x98   : > { %1088 = vmatpush.bf16.msrb.mxu1 %v3265_v53 }
  0x9a   : > { %1006 = vmatpush.bf16.msrb.mxu3 %v3295_v16  ;;  %1076 = vmatpush.bf16.msrb.mxu0 %v3269_v59 }
  0x9c   : > { %1089 = vmatpush.bf16.msrb.mxu1 %v3276_v62 }
  0x9e   : > { %1007 = vmatpush.bf16.msrb.mxu3 %v3306_v21  ;;  %1077 = vmatpush.bf16.msrb.mxu0 %v3281_v4 }
  0xa0   : > { %1090 = vmatpush.bf16.msrb.mxu1 %v3288_v7 }
  0xa2   : > { %1008 = vmatpush.bf16.msrb.mxu3 %v3316_v27  ;;  %1078 = vmatpush.bf16.msrb.mxu0 %v3292_v15 }
  0xa4   : > { %1091 = vmatpush.bf16.msrb.mxu1 %v3299_v17 }
  0xc2   : > { %v585_v9 = vpop.f32.mrf.mxu0 }
  0xc3   : > { %v586_v57 = vadd.f32 %v585_v9, %v535_v24 }
  0xc4   : > { %v604_v13 = vpop.f32.mrf.mxu1 }
  0xc5   : > { %v605_v49 = vadd.f32 %v604_v13, %v536_v31 }
  0xc8   : > { %v3374_v28 = vpop.f32.mrf.mxu3 }
  0xca   : > { %v587_v29 = vpop.f32.mrf.mxu0 }
  0xcb   : > { %v3376_v30 = vadd.f32 %v587_v29, %v535_v24 }
  0xcc   : > { %v606_v32 = vpop.f32.mrf.mxu1 }
  0xcd   : > { %v3378_v33 = vadd.f32 %v606_v32, %v536_v31 }
  0xd0   : > { %v625_v35 = vpop.f32.mrf.mxu3 }
  0xd1   : > { %v3380_v36 = vadd.f32 %v625_v35, %v537_v34 }
  0xd2   : > { %v590_v38 = vpop.f32.mrf.mxu0 }
  0xd3   : > { %v3382_v39 = vadd.f32 %v590_v38, %v535_v24 }
  0xd4   : > { %v609_v40 = vpop.f32.mrf.mxu1 }
  0xd5   : > { %v3384_v41 = vadd.f32 %v609_v40, %v536_v31 }
  0xd8   : > { %v628_v43 = vpop.f32.mrf.mxu3 }
  0xd9   : > { %v3386_v44 = vadd.f32 %v628_v43, %v537_v34 }
  0xda   : > { %v592_v45 = vpop.f32.mrf.mxu0 }
  0xdb   : > { %v3388_v46 = vadd.f32 %v592_v45, %v535_v24  ;;  %v624_v24 = vadd.f32 %v3374_v28, %v537_v34 }
  0xdc   : > { %v611_v47 = vpop.f32.mrf.mxu1 }
  0xdd   : > { %v3390_v48 = vadd.f32 %v611_v47, %v536_v31 }
  0xe0   : > { %v630_v50 = vpop.f32.mrf.mxu3 }
  0xe1   : > { %v3392_v51 = vadd.f32 %v630_v50, %v537_v34  ;;  %v2394_v34 = vld [vmem:[#allocation9 + $0xa8] sm:$0xf] }
  0xe2   : > { %v803_v53 = vpop.f32.mrf.mxu0 }
  0xe3   : > { %v840_v54 = vadd.f32 %v803_v53, %v605_v49 }
  0xe4   : > { %v816_v56 = vpop.f32.mrf.mxu1 }
  0xe5   : > { %v2301_v55 = vmul.f32 -1.442695, %v840_v54  ;;  %v863_v25 = vadd.f32 %v3397_v14, %v816_v56  ;;  %v2593_v54 = vld [vmem:[#allocation9 + $0xb0] sm:$0xf0] }
  0xe7   : > { %2734 = vpow2.f32 %v2301_v55  ;;  %v2382_v55 = vld [vmem:[#allocation9 + $0x90] sm:$0xf] }
  0xe8   : > { %v790_v58 = vpop.f32.mrf.mxu3 }
  0xe9   : > { %v820_v59 = vadd.f32 %v790_v58, %v586_v57  ;;  %v2590_v57 = vld [vmem:[#allocation9 + $0x98] sm:$0xf0] }
  0xea   : > { %v805_v60 = vpop.f32.mrf.mxu0 }
  0xeb   : > { %v2300_v62 = vmul.f32 -1.442695, %v820_v59 }
  0xec   : > { %v818_v1 = vpop.f32.mrf.mxu1 }
  0xed   : > { %v2735_v63 = vpop.eup %2734  ;;  %2736 = vpow2.f32 %v2300_v62  ;;  %v2358_v62 = vld [vmem:[#allocation9 + $0x60] sm:$0xf] }
  0xee   : > { %v844_v0 = vadd.f32 1.0, %v2735_v63  ;;  %v2584_v63 = vld [vmem:[#allocation9 + $0x68] sm:$0xf0] }
  0xf0   : > { %v792_v2 = vpop.f32.mrf.mxu3  ;;  %2738 = vrcp.f32 %v844_v0  ;;  %v856_v29 = vand.u32 2147483648, %v844_v0  ;;  %vm850_vm7 = vweird.f32 %v844_v0  ;;  %v854_v32 = vand.u32 2147483647, %v844_v0 }
  0xf1   : > { %v2359_v2 = vor.u32 %v2584_v63, %v2358_v62  ;;  %v2594_v62 = vld [vmem:[#allocation9 + $0xb8] sm:$0xf0]  ;;  %v2490_v63 = vld [vmem:[#allocation11 + $0xa8] sm:$0xf] }
  0xf2   : > { %v857_v40 = vor.u32 1.1754944e-38, %v856_v29  ;;  %vm855_vm9 = vcmp.eq.f32.partialorder %v854_v32, 8.507059e+37  ;;  %v2572_v29 = vld [vmem:[#allocation9 + $0x8] sm:$0xf0] }
  0xf3   : > { %v2737_v3 = vpop.eup %2736 }
  0xf4   : > { %v824_v4 = vadd.f32 1.0, %v2737_v3 }
  0xf6   : > { %2740 = vrcp.f32 %v824_v4  ;;  %v2739_v5 = vpop.eup %2738  ;;  %v836_v15 = vand.u32 2147483648, %v824_v4  ;;  %v834_v18 = vand.u32 2147483647, %v824_v4  ;;  %vm830_vm3 = vweird.f32 %v824_v4 }
  0xf7   : > { %v846_v7 = vmul.f32 %v2739_v5, %v844_v0  ;;  %vm851_vm6 = vweird.f32 %v2739_v5 }
  0xf8   : > { %v837_v26 = vor.u32 1.1754944e-38, %v836_v15  ;;  %vm835_vm5 = vcmp.eq.f32.partialorder %v834_v18, 8.507059e+37  ;;  %vm852_vm8 = vmor %vm850_vm7, %vm851_vm6  ;;  %v2575_v18 = vld [vmem:[#allocation9 + $0x20] sm:$0xf0] }
  0xf9   : > { %v847_v11 = vsub.f32 1.0, %v846_v7  ;;  %v2581_v7 = vld [vmem:[#allocation9 + $0x50] sm:$0xf0] }
  0xfb   : > { %v848_v19 = vmul.f32 %v2739_v5, %v847_v11  ;;  %v2578_v11 = vld [vmem:[#allocation9 + $0x38] sm:$0xf0] }
  0xfc   : > { %v2741_v8 = vpop.eup %2740 }
  0xfd   : > { %v826_v10 = vmul.f32 %v2741_v8, %v824_v4  ;;  %vm831_vm2 = vweird.f32 %v2741_v8  ;;  %v849_v22 = vadd.f32 %v2739_v5, %v848_v19 }
  0xfe   : > { %vm832_vm4 = vmor %vm830_vm3, %vm831_vm2 }
  0xff   : > { %v827_v12 = vsub.f32 1.0, %v826_v10  ;;  %v853_v38 = vsel %vm852_vm8, %v2739_v5, %v849_v22  ;;  %v2346_v5 = vld [vmem:[#allocation9 + $0x48] sm:$0xf]  ;;  %v2334_v10 = vld [vmem:[#allocation9 + $0x30] sm:$0xf] }
 0x100   : > { %v858_v43 = vsel %vm855_vm9, %v857_v40, %v853_v38 }
 0x101   : > { %v828_v17 = vmul.f32 %v2741_v8, %v827_v12  ;;  %v867_v45 = vsub.f32 1.0, %v858_v43  ;;  %v869_v50 = vmul.f32 %v858_v43, %v3303_v20  ;;  %v2335_v12 = vor.u32 %v2578_v11, %v2334_v10  ;;  %v2614_v11 = vld [vmem:[#allocation11 + $0x98] sm:$0xf0] }
 0x103   : > { %v829_v23 = vadd.f32 %v2741_v8, %v828_v17  ;;  %v2322_v17 = vld [vmem:[#allocation9 + $0x18] sm:$0xf] }
 0x105   : > { %v833_v9 = vsel %vm832_vm4, %v2741_v8, %v829_v23  ;;  %v2347_v8 = vor.u32 %v2581_v7, %v2346_v5  ;;  %v2390_v5 = vld [vmem:[#allocation9 + $0x98] sm:$0xf]  ;;  %v2591_v7 = vld [vmem:[#allocation9 + $0xa0] sm:$0xf0] }
 0x106   : > { %v838_v13 = vsel %vm835_vm5, %v837_v26, %v833_v9  ;;  %v2323_v9 = vor.u32 %v2575_v18, %v2322_v17  ;;  %v2391_v10 = vor.u32 %v2591_v7, %v2390_v5  ;;  %v2586_v18 = vld [vmem:[#allocation9 + $0x7c] sm:$0xf]  ;;  %v2330_v7 = vld [vmem:[#allocation9 + $0x20] sm:$0xf] }
 0x107   : > { %v864_v31 = vmul.f32 %v863_v25, %v838_v13 }
 0x109   : > { %v865_v35 = vadd.f32 %v864_v31, %v624_v24  ;;  %v2310_v24 = vld [vmem:[#allocation9] sm:$0xf] }
 0x10a   : > { %v2311_v40 = vor.u32 %v2572_v29, %v2310_v24 }
 0x10b   : > { %2742 = vtanh.f32 %v865_v35 }
 0x111   : > { %v2743_v47 = vpop.eup %2742 }
 0x112   : > { %v868_v49 = vmul.f32 %v2743_v47, %v867_v45 }
 0x114   : > { %v3402_v53 = vadd.f32 %v869_v50, %v868_v49 }
 0x116   : > { %v878_v28 = vpack.c.bf16 %v3402_v53, %v3402_v53 }
 0x118   : > { %887 = vmatmul.bf16.vlgmr.msra.gmra.mxu2 %v878_v28  ;;  %900 = vmatmul.bf16.vlgmr.msra.gmra.mxu3 %v878_v28 }
 0x119   : > { %913 = vmatmul.bf16.vlgmr.msra.gmra.mxu0 %v878_v28  ;;  %1097 = vmatpush.bf16.msra.mxu2 %v3245_v37 }
 0x11d   : > { %1098 = vmatpush.bf16.msra.mxu2 %v3251_v42  ;;  %v2395_v42 = vor.u32 %v2593_v54, %v2394_v34 }
 0x11f   : > { %1368 = vmatpush.bf16.msra.mxu3 %v2395_v42 }
 0x121   : > { %1099 = vmatpush.bf16.msra.mxu2 %v3261_v52 }
 0x125   : > { %1100 = vmatpush.bf16.msra.mxu2 %v3272_v61 }
 0x129   : > { %1101 = vmatpush.bf16.msra.mxu2 %v3284_v6  ;;  %v2383_v6 = vor.u32 %v2590_v57, %v2382_v55 }
 0x12b   : > { %1369 = vmatpush.bf16.msra.mxu3 %v2383_v6 }
 0x12d   : > { %1102 = vmatpush.bf16.msra.mxu2 %v3295_v16  ;;  %v2370_v16 = vld [vmem:[#allocation9 + $0x78] sm:$0xf] }
 0x131   : > { %1103 = vmatpush.bf16.msra.mxu2 %v3306_v21 }
 0x135   : > { %1104 = vmatpush.bf16.msra.mxu2 %v3316_v27  ;;  %v2587_v27 = vld [vmem:[#allocation9 + $0x80] sm:$0xf0] }
 0x136   : > { %v2371_v60 = vor.u32 %v2587_v27, %v2370_v16 }
 0x138   : > { %1370 = vmatpush.bf16.msra.mxu3 %v2371_v60 }
 0x13c   : > { %1371 = vmatpush.bf16.msra.mxu3 %v2359_v2 }
 0x140   : > { %1372 = vmatpush.bf16.msra.mxu3 %v2347_v8  ;;  %v2478_v8 = vld [vmem:[#allocation11 + $0x90] sm:$0xf] }
 0x144   : > { %1373 = vmatpush.bf16.msra.mxu3 %v2335_v12 }
 0x148   : > { %1374 = vmatpush.bf16.msra.mxu3 %v2323_v9  ;;  %v2588_v9 = vld [vmem:[#allocation9 + $0x88] sm:$0xf0] }
 0x14c   : > { %1375 = vmatpush.bf16.msra.mxu3 %v2311_v40 }
 0x196   : > { %v3414_v20 = vpop.f32.mrf.mxu0 }
 0x197   : > { %v958_v45 = vadd.f32 %v3397_v14, %v3414_v20 }
 0x19b   : > { %v888_v37 = vpop.f32.mrf.mxu2  ;;  %v901_v56 = vpop.f32.mrf.mxu3 }
 0x19c   : > { %v918_v52 = vadd.f32 %v888_v37, %v3376_v30  ;;  %v938_v61 = vadd.f32 %v901_v56, %v3378_v33 }
 0x19e   : > { %v2302_v58 = vmul.f32 -1.442695, %v918_v52  ;;  %v2303_v21 = vmul.f32 -1.442695, %v938_v61  ;;  %v916_v59 = vpop.f32.mrf.mxu0 }
 0x19f   : > { %v2402_v59 = vld [vmem:[#allocation9 + $0xb0] sm:$0xf] }
 0x1a0   : > { %2744 = vpow2.f32 %v2302_v58  ;;  %v2592_v58 = vld [vmem:[#allocation9 + $0xac] sm:$0xf]  ;;  %v2403_v2 = vor.u32 %v2594_v62, %v2402_v59  ;;  %v2342_v62 = vld [vmem:[#allocation9 + $0x38] sm:$0xf] }
 0x1a1   : > { %2746 = vpow2.f32 %v2303_v21  ;;  %v2396_v21 = vld [vmem:[#allocation9 + $0xb4] sm:$0xf0] }
 0x1a2   : > { %v2399_v60 = vor.u32 %v2592_v58, %v2396_v21  ;;  %v2577_v58 = vld [vmem:[#allocation9 + $0x34] sm:$0xf]  ;;  %v2336_v21 = vld [vmem:[#allocation9 + $0x3c] sm:$0xf0] }
 0x1a3   : > { %v890_v0 = vpop.f32.mrf.mxu2  ;;  %v903_v1 = vpop.f32.mrf.mxu3 }
 0x1a4   : > { %v2617_v0 = vld [vmem:[#allocation11 + $0xb0] sm:$0xf0]  ;;  %1387 = vmatpush.bf16.msra.mxu0 %v2399_v60  ;;  %v2339_v60 = vor.u32 %v2577_v58, %v2336_v21 }
 0x1a6   : > { %v2745_v30 = vpop.eup %2744 }
 0x1a7   : > { %v2747_v3 = vpop.eup %2746  ;;  %v922_v33 = vadd.f32 1.0, %v2745_v30  ;;  %v3432_v30 = vor.u32 %v2617_v0, %v2490_v63  ;;  %v2579_v63 = vld [vmem:[#allocation9 + $0x40] sm:$0xf0] }
 0x1a8   : > { %v942_v4 = vadd.f32 1.0, %v2747_v3  ;;  %v2343_v0 = vor.u32 %v2579_v63, %v2342_v62 }
 0x1a9   : > { %2748 = vrcp.f32 %v922_v33  ;;  %v934_v13 = vand.u32 2147483648, %v922_v33  ;;  %v932_v32 = vand.u32 2147483647, %v922_v33  ;;  %vm928_vm11 = vweird.f32 %v922_v33 }
 0x1aa   : > { %2750 = vrcp.f32 %v942_v4  ;;  %v954_v34 = vand.u32 2147483648, %v942_v4  ;;  %vm948_vm15 = vweird.f32 %v942_v4  ;;  %v952_v54 = vand.u32 2147483647, %v942_v4 }
 0x1ab   : > { %v935_v43 = vor.u32 1.1754944e-38, %v934_v13  ;;  %vm933_vm13 = vcmp.eq.f32.partialorder %v932_v32, 8.507059e+37  ;;  %v2466_v13 = vld [vmem:[#allocation11 + $0x78] sm:$0xf]  ;;  %v2583_v32 = vld [vmem:[#allocation9 + $0x64] sm:$0xf] }
 0x1ac   : > { %v955_v56 = vor.u32 1.1754944e-38, %v954_v34  ;;  %vm953_vm1 = vcmp.eq.f32.partialorder %v952_v54, 8.507059e+37 }
 0x1af   : > { %v2749_v15 = vpop.eup %2748 }
 0x1b0   : > { %v2751_v19 = vpop.eup %2750  ;;  %v924_v23 = vmul.f32 %v2749_v15, %v922_v33  ;;  %vm929_vm10 = vweird.f32 %v2749_v15  ;;  %v2384_v33 = vld [vmem:[#allocation9 + $0x9c] sm:$0xf0] }
 0x1b1   : > { %v944_v25 = vmul.f32 %v2751_v19, %v942_v4  ;;  %vm930_vm12 = vmor %vm928_vm11, %vm929_vm10  ;;  %vm949_vm14 = vweird.f32 %v2751_v19 }
 0x1b2   : > { %v925_v26 = vsub.f32 1.0, %v924_v23  ;;  %vm950_vm0 = vmor %vm948_vm15, %vm949_vm14  ;;  %v2378_v23 = vld [vmem:[#allocation9 + $0x80] sm:$0xf] }
 0x1b3   : > { %v945_v22 = vsub.f32 1.0, %v944_v25  ;;  %v2379_v29 = vor.u32 %v2588_v9, %v2378_v23  ;;  %v2312_v23 = vld [vmem:[#allocation9 + $0xc] sm:$0xf0]  ;;  %v2318_v9 = vld [vmem:[#allocation9 + $0x8] sm:$0xf] }
 0x1b4   : > { %v926_v31 = vmul.f32 %v2749_v15, %v925_v26 }
 0x1b5   : > { %v946_v35 = vmul.f32 %v2751_v19, %v945_v22  ;;  %v2611_v22 = vld [vmem:[#allocation11 + $0x80] sm:$0xf0] }
 0x1b6   : > { %v927_v38 = vadd.f32 %v2749_v15, %v926_v31  ;;  %v3441_v31 = vor.u32 %v2611_v22, %v2466_v13  ;;  %v2573_v13 = vld [vmem:[#allocation9 + $0x10] sm:$0xf0] }
 0x1b7   : > { %v947_v50 = vadd.f32 %v2751_v19, %v946_v35  ;;  %v2366_v35 = vld [vmem:[#allocation9 + $0x68] sm:$0xf] }
 0x1b8   : > { %v931_v47 = vsel %vm930_vm12, %v2749_v15, %v927_v38 }
 0x1b9   : > { %v936_v49 = vsel %vm933_vm13, %v935_v43, %v931_v47  ;;  %v951_v37 = vsel %vm950_vm0, %v2751_v19, %v947_v50  ;;  %v2372_v19 = vld [vmem:[#allocation9 + $0x84] sm:$0xf0]  ;;  %v2585_v43 = vld [vmem:[#allocation9 + $0x70] sm:$0xf0]  ;;  %v2608_v47 = vld [vmem:[#allocation11 + $0x68] sm:$0xf0] }
 0x1ba   : > { %v959_v28 = vmul.f32 %v958_v45, %v936_v49  ;;  %v956_v42 = vsel %vm953_vm1, %v955_v56, %v951_v37  ;;  %v2375_v26 = vor.u32 %v2586_v18, %v2372_v19  ;;  %v2454_v45 = vld [vmem:[#allocation11 + $0x60] sm:$0xf]  ;;  %v2367_v50 = vor.u32 %v2585_v43, %v2366_v35  ;;  %v2348_v37 = vld [vmem:[#allocation9 + $0x54] sm:$0xf0]  ;;  %v2354_v56 = vld [vmem:[#allocation9 + $0x50] sm:$0xf] }
 0x1bb   : > { %v962_v57 = vsub.f32 1.0, %v956_v42  ;;  %v964_v61 = vmul.f32 %v956_v42, %v3402_v53  ;;  %v2571_v19 = vld [vmem:[#allocation9 + $0x4] sm:$0xf]  ;;  %v2319_v43 = vor.u32 %v2573_v13, %v2318_v9  ;;  %v2612_v9 = vld [vmem:[#allocation11 + $0x88] sm:$0xf0] }
 0x1bc   : > { %v960_v55 = vadd.f32 %v959_v28, %v3380_v36  ;;  %v3446_v28 = vor.u32 %v2608_v47, %v2454_v45  ;;  %v2315_v35 = vor.u32 %v2571_v19, %v2312_v23  ;;  %v2610_v19 = vld [vmem:[#allocation11 + $0x7c] sm:$0xf]  ;;  %v2468_v23 = vld [vmem:[#allocation11 + $0x84] sm:$0xf0] }
 0x1be   : > { %2752 = vtanh.f32 %v960_v55  ;;  %v2580_v55 = vld [vmem:[#allocation9 + $0x4c] sm:$0xf] }
 0x1bf   : > { %v2351_v42 = vor.u32 %v2580_v55, %v2348_v37 }
 0x1c4   : > { %v2753_v20 = vpop.eup %2752 }
 0x1c5   : > { %v963_v52 = vmul.f32 %v2753_v20, %v962_v57  ;;  %v2582_v57 = vld [vmem:[#allocation9 + $0x58] sm:$0xf0]  ;;  %v2442_v20 = vld [vmem:[#allocation11 + $0x48] sm:$0xf] }
 0x1c7   : > { %v3422_v6 = vadd.f32 %v964_v61, %v963_v52  ;;  %v2355_v61 = vor.u32 %v2582_v57, %v2354_v56 }
 0x1c9   : > { %v974_v16 = vpack.c.bf16 %v3422_v6, %v3422_v6  ;;  %v3428_v36 = vpack.c.bf16 %v3422_v6, %v3402_v53  ;;  %v2589_v53 = vld [vmem:[#allocation9 + $0x94] sm:$0xf] }
 0x1ca   : > { %v2387_v4 = vor.u32 %v2589_v53, %v2384_v33  ;;  %v2324_v33 = vld [vmem:[#allocation9 + $0x24] sm:$0xf0] }
 0x1cb   : > { %983 = vmatmul.bf16.vlgmr.msra.gmra.mxu1 %v974_v16  ;;  %996 = vmatmul.bf16.vlgmr.msrb.gmra.mxu2 %v974_v16 }
 0x1cc   : > { %1009 = vmatmul.bf16.vlgmr.msrb.gmra.mxu3 %v974_v16  ;;  %1406 = vmatpush.bf16.msra.mxu1 %v2403_v2  ;;  %v2605_v16 = vld [vmem:[#allocation11 + $0x50] sm:$0xf0]  ;;  %v2602_v2 = vld [vmem:[#allocation11 + $0x38] sm:$0xf0] }
 0x1cd   : > { %1571 = vmatpush.bf16.msrb.mxu2 %v3432_v30  ;;  %1388 = vmatpush.bf16.msra.mxu0 %v2387_v4 }
 0x1d0   : > { %1407 = vmatpush.bf16.msra.mxu1 %v2391_v10  ;;  %v2418_v10 = vld [vmem:[#allocation11 + $0x18] sm:$0xf] }
 0x1d1   : > { %1389 = vmatpush.bf16.msra.mxu0 %v2375_v26 }
 0x1d4   : > { %1408 = vmatpush.bf16.msra.mxu1 %v2379_v29  ;;  %v2406_v29 = vld [vmem:[#allocation11] sm:$0xf] }
 0x1d8   : > { %1409 = vmatpush.bf16.msra.mxu1 %v2367_v50 }
 0x1dc   : > { %1376 = vmatmul.bf16.vlgmr.msra.gmra.mxu3 %v3428_v36  ;;  %1410 = vmatpush.bf16.msra.mxu1 %v2355_v61 }
 0x1e0   : > { %1411 = vmatpush.bf16.msra.mxu1 %v2343_v0  ;;  %v2492_v0 = vld [vmem:[#allocation11 + $0xb4] sm:$0xf0] }
 0x248   : > { %v984_v27 = vpop.f32.mrf.mxu1 }
 0x249   : > { %v1014_v1 = vadd.f32 %v984_v27, %v3382_v39  ;;  %v3435_v39 = vor.u32 %v2614_v11, %v2478_v8  ;;  %v3452_v27 = vor.u32 %v2605_v16, %v2442_v20  ;;  %v2576_v8 = vld [vmem:[#allocation9 + $0x28] sm:$0xf0] }
 0x24a   : > { %v2331_v18 = vor.u32 %v2576_v8, %v2330_v7 }
 0x24b   : > { %v2304_v3 = vmul.f32 -1.442695, %v1014_v1  ;;  %1572 = vmatpush.bf16.msrb.mxu2 %v3435_v39  ;;  %v2430_v1 = vld [vmem:[#allocation11 + $0x30] sm:$0xf] }
 0x24c   : > { %v3457_v5 = vor.u32 %v2602_v2, %v2430_v1  ;;  %1412 = vmatpush.bf16.msra.mxu1 %v2331_v18  ;;  %v2498_v1 = vld [vmem:[#allocation11 + $0xb0] sm:$0xf]  ;;  %v2615_v18 = vld [vmem:[#allocation11 + $0xa0] sm:$0xf0] }
 0x24d   : > { %2754 = vpow2.f32 %v2304_v3  ;;  %v2574_v3 = vld [vmem:[#allocation9 + $0x1c] sm:$0xf] }
 0x24e   : > { %v997_v12 = vpop.f32.mrf.mxu2  ;;  %v2327_v11 = vor.u32 %v2574_v3, %v2324_v33  ;;  %v2618_v33 = vld [vmem:[#allocation11 + $0xb8] sm:$0xf0] }
 0x24f   : > { %v1034_v15 = vadd.f32 %v997_v12, %v3384_v41  ;;  %v3438_v17 = vpop.f32.mrf.mxu3  ;;  %v2360_v41 = vld [vmem:[#allocation9 + $0x6c] sm:$0xf0]  ;;  %1573 = vmatpush.bf16.msrb.mxu2 %v3441_v31  ;;  %v2599_v12 = vld [vmem:[#allocation11 + $0x20] sm:$0xf0]  ;;  %v3502_v7 = vor.u32 %v2618_v33, %v2498_v1  ;;  %v2600_v33 = vld [vmem:[#allocation11 + $0x28] sm:$0xf0] }
 0x250   : > { %v986_v25 = vpop.f32.mrf.mxu1  ;;  %v2363_v40 = vor.u32 %v2583_v32, %v2360_v41  ;;  %v3461_v26 = vor.u32 %v2599_v12, %v2418_v10  ;;  %v2596_v32 = vld [vmem:[#allocation11 + $0x8] sm:$0xf0]  ;;  %1413 = vmatpush.bf16.msra.mxu1 %v2319_v43  ;;  %v2480_v12 = vld [vmem:[#allocation11 + $0x9c] sm:$0xf0] }
 0x251   : > { %v2305_v24 = vmul.f32 -1.442695, %v1034_v15  ;;  %v3467_v47 = vor.u32 %v2596_v32, %v2406_v29  ;;  %v2607_v29 = vld [vmem:[#allocation11 + $0x64] sm:$0xf] }
 0x252   : > { %1390 = vmatpush.bf16.msra.mxu0 %v2363_v40 }
 0x253   : > { %v2755_v38 = vpop.eup %2754  ;;  %2756 = vpow2.f32 %v2305_v24  ;;  %1574 = vmatpush.bf16.msrb.mxu2 %v3446_v28 }
 0x254   : > { %v3443_v49 = vadd.f32 1.0, %v2755_v38 }
 0x256   : > { %2758 = vrcp.f32 %v3443_v49  ;;  %v999_v34 = vpop.f32.mrf.mxu2  ;;  %1391 = vmatpush.bf16.msra.mxu0 %v2351_v42  ;;  %v1030_v25 = vand.u32 2147483648, %v3443_v49  ;;  %v1028_v24 = vand.u32 2147483647, %v3443_v49  ;;  %vm1024_vm3 = vweird.f32 %v3443_v49 }
 0x257   : > { %v1012_v54 = vpop.f32.mrf.mxu3  ;;  %1575 = vmatpush.bf16.msrb.mxu2 %v3452_v27 }
 0x258   : > { %v1031_v45 = vor.u32 1.1754944e-38, %v1030_v25  ;;  %vm1029_vm5 = vcmp.eq.f32.partialorder %v1028_v24, 8.507059e+37  ;;  %v1054_v54 = vadd.f32 %v3397_v14, %v3438_v17  ;;  %v2474_v25 = vld [vmem:[#allocation11 + $0x80] sm:$0xf] }
 0x259   : > { %v2757_v52 = vpop.eup %2756  ;;  %v3518_v24 = vor.u32 %v2612_v9, %v2474_v25  ;;  %v2408_v25 = vld [vmem:[#allocation11 + $0xc] sm:$0xf0]  ;;  %v2414_v9 = vld [vmem:[#allocation11 + $0x8] sm:$0xf] }
 0x25a   : > { %v3450_v59 = vadd.f32 1.0, %v2757_v52  ;;  %1392 = vmatpush.bf16.msra.mxu0 %v2339_v60 }
 0x25b   : > { %1576 = vmatpush.bf16.msrb.mxu2 %v3457_v5 }
 0x25c   : > { %v2759_v53 = vpop.eup %2758  ;;  %2760 = vrcp.f32 %v3450_v59  ;;  %v1048_v42 = vand.u32 2147483647, %v3450_v59  ;;  %vm1044_vm7 = vweird.f32 %v3450_v59 }
 0x25d   : > { %v1020_v4 = vmul.f32 %v2759_v53, %v3443_v49  ;;  %vm1025_vm2 = vweird.f32 %v2759_v53  ;;  %v1050_v49 = vand.u32 2147483648, %v3450_v59 }
 0x25e   : > { %1393 = vmatpush.bf16.msra.mxu0 %v2327_v11  ;;  %vm1026_vm4 = vmor %vm1024_vm3, %vm1025_vm2  ;;  %vm1049_vm9 = vcmp.eq.f32.partialorder %v1048_v42, 8.507059e+37  ;;  %v2613_v11 = vld [vmem:[#allocation11 + $0x94] sm:$0xf]  ;;  %v2450_v42 = vld [vmem:[#allocation11 + $0x50] sm:$0xf] }
 0x25f   : > { %v1021_v15 = vsub.f32 1.0, %v1020_v4  ;;  %1577 = vmatpush.bf16.msrb.mxu2 %v3461_v26  ;;  %v1051_v52 = vor.u32 1.1754944e-38, %v1050_v49  ;;  %v2604_v49 = vld [vmem:[#allocation11 + $0x4c] sm:$0xf] }
 0x261   : > { %v1022_v22 = vmul.f32 %v2759_v53, %v1021_v15  ;;  %v2486_v15 = vld [vmem:[#allocation11 + $0x98] sm:$0xf] }
 0x262   : > { %v2761_v41 = vpop.eup %2760  ;;  %1394 = vmatpush.bf16.msra.mxu0 %v2315_v35  ;;  %v2456_v35 = vld [vmem:[#allocation11 + $0x6c] sm:$0xf0] }
 0x263   : > { %v1040_v38 = vmul.f32 %v2761_v41, %v3450_v59  ;;  %v1023_v40 = vadd.f32 %v2759_v53, %v1022_v22  ;;  %vm1045_vm6 = vweird.f32 %v2761_v41  ;;  %1578 = vmatpush.bf16.msrb.mxu2 %v3467_v47  ;;  %v3516_v22 = vor.u32 %v2610_v19, %v2468_v23  ;;  %v2595_v19 = vld [vmem:[#allocation11 + $0x4] sm:$0xf] }
 0x264   : > { %vm1046_vm8 = vmor %vm1044_vm7, %vm1045_vm6 }
 0x265   : > { %v1041_v50 = vsub.f32 1.0, %v1040_v38  ;;  %v1027_v34 = vsel %vm1026_vm4, %v2759_v53, %v1023_v40  ;;  %v2462_v38 = vld [vmem:[#allocation11 + $0x68] sm:$0xf]  ;;  %v2609_v40 = vld [vmem:[#allocation11 + $0x70] sm:$0xf0] }
 0x266   : > { %v1032_v55 = vsel %vm1029_vm5, %v1031_v45, %v1027_v34  ;;  %v3524_v45 = vor.u32 %v2607_v29, %v2456_v35  ;;  %v2597_v29 = vld [vmem:[#allocation11 + $0x10] sm:$0xf0] }
 0x267   : > { %v1042_v37 = vmul.f32 %v2761_v41, %v1041_v50  ;;  %v1055_v56 = vmul.f32 %v1054_v54, %v1032_v55  ;;  %v3526_v50 = vor.u32 %v2609_v40, %v2462_v38  ;;  %v3569_v38 = vor.u32 %v2595_v19, %v2408_v25  ;;  %v3654_v19 = vld [vmem:[%s3771_s8] ss:$0 sm:$0xff] }
 0x268   : > { %v3571_v40 = vor.u32 %v2597_v29, %v2414_v9 }
 0x269   : > { %v1043_v57 = vadd.f32 %v2761_v41, %v1042_v37  ;;  %v1056_v20 = vadd.f32 %v1055_v56, %v3386_v44  ;;  %v3484_v44 = vld [vmem:[#allocation5 + $0x8] sm:$0xff] }
 0x26a   : > { %v3488_v59 = vpack.c.bf16 %v3484_v44, %v3484_v44  ;;  %v2444_v56 = vld [vmem:[#allocation11 + $0x54] sm:$0xf0] }
 0x26b   : > { %v1047_v17 = vsel %vm1046_vm8, %v2761_v41, %v1043_v57  ;;  %2762 = vtanh.f32 %v1056_v20  ;;  %v2606_v57 = vld [vmem:[#allocation11 + $0x58] sm:$0xf0]  ;;  %v2601_v20 = vld [vmem:[#allocation11 + $0x34] sm:$0xf] }
 0x26c   : > { %v1052_v61 = vsel %vm1049_vm9, %v1051_v52, %v1047_v17  ;;  %v3540_v52 = vor.u32 %v2604_v49, %v2444_v56  ;;  %v3542_v17 = vor.u32 %v2606_v57, %v2450_v42 }
 0x26d   : > { %v1058_v16 = vsub.f32 1.0, %v1052_v61  ;;  %v1060_v60 = vmul.f32 %v1052_v61, %v3422_v6  ;;  %v2616_v6 = vld [vmem:[#allocation11 + $0xac] sm:$0xf]  ;;  %v2432_v61 = vld [vmem:[#allocation11 + $0x3c] sm:$0xf0] }
 0x26e   : > { %v3498_v53 = vor.u32 %v2616_v6, %v2492_v0  ;;  %v2598_v6 = vld [vmem:[#allocation11 + $0x1c] sm:$0xf] }
 0x270   : > { %1584 = vmatpush.bf16.msrb.mxu3 %v3498_v53 }
 0x271   : > { %v2763_v58 = vpop.eup %2762 }
 0x272   : > { %v1059_v21 = vmul.f32 %v2763_v58, %v1058_v16  ;;  %v2438_v16 = vld [vmem:[#allocation11 + $0x38] sm:$0xf]  ;;  %v2603_v58 = vld [vmem:[#allocation11 + $0x40] sm:$0xf0] }
 0x274   : > { %v3477_v62 = vadd.f32 %v1060_v60, %v1059_v21  ;;  %v3546_v60 = vor.u32 %v2601_v20, %v2432_v61 }
 0x276   : > { %v1070_v63 = vpack.c.bf16 %v3477_v62, %v3477_v62 }
 0x278   : > { %1079 = vmatmul.bf16.vlgmr.msrb.gmra.mxu0 %v1070_v63  ;;  %1092 = vmatmul.bf16.vlgmr.msrb.gmra.mxu1 %v1070_v63 }
 0x279   : > { %1105 = vmatmul.bf16.vlgmr.msra.gmra.mxu2 %v1070_v63  ;;  %1666 = vmatpush.bf16.msrb.mxu1 %v3432_v30  ;;  %v3548_v63 = vor.u32 %v2603_v58, %v2438_v16 }
 0x27a   : > { %1679 = vmatpush.bf16.msra.mxu2 %v3498_v53  ;;  %1597 = vmatpush.bf16.msrb.mxu0 %v3502_v7 }
 0x27d   : > { %1667 = vmatpush.bf16.msrb.mxu1 %v3435_v39 }
 0x281   : > { %1668 = vmatpush.bf16.msrb.mxu1 %v3441_v31 }
 0x285   : > { %1669 = vmatpush.bf16.msrb.mxu1 %v3446_v28 }
 0x288   : > { %1395 = vmatmul.bf16.vlgmr.msra.gmra.mxu0 %v3428_v36  ;;  %1414 = vmatmul.bf16.vlgmr.msra.gmra.mxu1 %v3428_v36 }
 0x289   : > { %1579 = vmatmul.bf16.vlgmr.msrb.gmra.mxu2 %v3488_v59  ;;  %1670 = vmatpush.bf16.msrb.mxu1 %v3452_v27 }
 0x28d   : > { %1671 = vmatpush.bf16.msrb.mxu1 %v3457_v5 }
 0x291   : > { %1672 = vmatpush.bf16.msrb.mxu1 %v3461_v26 }
 0x295   : > { %1673 = vmatpush.bf16.msrb.mxu1 %v3467_v47 }
 0x299   : > { %1772 = vmatpush.bf16.msra.mxu1 %v3498_v53 }
 0x2f5   : > { %v1080_v2 = vpop.f32.mrf.mxu0  ;;  %v1093_v3 = vpop.f32.mrf.mxu1 }
 0x2f6   : > { %v1110_v36 = vadd.f32 %v1080_v2, %v3388_v46  ;;  %v1130_v4 = vadd.f32 %v1093_v3, %v3390_v48  ;;  %v3508_v46 = vor.u32 %v2613_v11, %v2480_v12  ;;  %v3510_v48 = vor.u32 %v2615_v18, %v2486_v15  ;;  %v2420_v2 = vld [vmem:[#allocation11 + $0x24] sm:$0xf0]  ;;  %v2426_v3 = vld [vmem:[#allocation11 + $0x20] sm:$0xf] }
 0x2f7   : > { %v3560_v15 = vor.u32 %v2598_v6, %v2420_v2  ;;  %v3562_v18 = vor.u32 %v2600_v33, %v2426_v3 }
 0x2f8   : > { %v2306_v8 = vmul.f32 -1.442695, %v1110_v36  ;;  %v2307_v10 = vmul.f32 -1.442695, %v1130_v4  ;;  %1585 = vmatpush.bf16.msrb.mxu3 %v3508_v46  ;;  %1598 = vmatpush.bf16.msrb.mxu0 %v3510_v48 }
 0x2f9   : > { %1680 = vmatpush.bf16.msra.mxu2 %v3508_v46  ;;  %1773 = vmatpush.bf16.msra.mxu1 %v3508_v46 }
 0x2fa   : > { %2764 = vpow2.f32 %v2306_v8 }
 0x2fb   : > { %2766 = vpow2.f32 %v2307_v10 }
 0x2fc   : > { %v3512_v13 = vpop.f32.mrf.mxu2  ;;  %1586 = vmatpush.bf16.msrb.mxu3 %v3516_v22  ;;  %1599 = vmatpush.bf16.msrb.mxu0 %v3518_v24 }
 0x2fd   : > { %v1082_v32 = vpop.f32.mrf.mxu0  ;;  %v1095_v41 = vpop.f32.mrf.mxu1  ;;  %1681 = vmatpush.bf16.msra.mxu2 %v3516_v22  ;;  %1774 = vmatpush.bf16.msra.mxu1 %v3516_v22 }
 0x300   : > { %v2765_v43 = vpop.eup %2764  ;;  %1587 = vmatpush.bf16.msrb.mxu3 %v3524_v45  ;;  %1600 = vmatpush.bf16.msrb.mxu0 %v3526_v50 }
 0x301   : > { %v2767_v34 = vpop.eup %2766  ;;  %v3528_v54 = vadd.f32 1.0, %v2765_v43  ;;  %1682 = vmatpush.bf16.msra.mxu2 %v3524_v45  ;;  %1775 = vmatpush.bf16.msra.mxu1 %v3524_v45 }
 0x302   : > { %v3532_v55 = vadd.f32 1.0, %v2767_v34  ;;  %v1150_v34 = vadd.f32 %v3397_v14, %v3512_v13 }
 0x303   : > { %2768 = vrcp.f32 %v3528_v54  ;;  %v1124_v8 = vand.u32 2147483647, %v3528_v54  ;;  %v1126_v12 = vand.u32 2147483648, %v3528_v54  ;;  %vm1120_vm11 = vweird.f32 %v3528_v54 }
 0x304   : > { %2770 = vrcp.f32 %v3532_v55  ;;  %v1108_v37 = vpop.f32.mrf.mxu2  ;;  %1588 = vmatpush.bf16.msrb.mxu3 %v3540_v52  ;;  %1601 = vmatpush.bf16.msrb.mxu0 %v3542_v17  ;;  %v1146_v56 = vand.u32 2147483648, %v3532_v55  ;;  %vm1140_vm15 = vweird.f32 %v3532_v55  ;;  %v1144_v57 = vand.u32 2147483647, %v3532_v55 }
 0x305   : > { %1683 = vmatpush.bf16.msra.mxu2 %v3540_v52  ;;  %1776 = vmatpush.bf16.msra.mxu1 %v3540_v52  ;;  %v1127_v35 = vor.u32 1.1754944e-38, %v1126_v12  ;;  %vm1125_vm13 = vcmp.eq.f32.partialorder %v1124_v8, 8.507059e+37 }
 0x306   : > { %v1147_v20 = vor.u32 1.1754944e-38, %v1146_v56  ;;  %vm1145_vm1 = vcmp.eq.f32.partialorder %v1144_v57, 8.507059e+37 }
 0x308   : > { %1589 = vmatpush.bf16.msrb.mxu3 %v3546_v60  ;;  %1602 = vmatpush.bf16.msrb.mxu0 %v3548_v63 }
 0x309   : > { %v2769_v21 = vpop.eup %2768  ;;  %1684 = vmatpush.bf16.msra.mxu2 %v3546_v60  ;;  %1777 = vmatpush.bf16.msra.mxu1 %v3546_v60 }
 0x30a   : > { %v2771_v0 = vpop.eup %2770  ;;  %v1116_v1 = vmul.f32 %v2769_v21, %v3528_v54  ;;  %vm1121_vm10 = vweird.f32 %v2769_v21 }
 0x30b   : > { %v1136_v36 = vmul.f32 %v2771_v0, %v3532_v55  ;;  %vm1122_vm12 = vmor %vm1120_vm11, %vm1121_vm10  ;;  %vm1141_vm14 = vweird.f32 %v2771_v0 }
 0x30c   : > { %v1117_v4 = vsub.f32 1.0, %v1116_v1  ;;  %v3555_v10 = vpop.f32.mrf.mxu2  ;;  %1590 = vmatpush.bf16.msrb.mxu3 %v3560_v15  ;;  %1603 = vmatpush.bf16.msrb.mxu0 %v3562_v18  ;;  %vm1142_vm0 = vmor %vm1140_vm15, %vm1141_vm14 }
 0x30d   : > { %v1137_v11 = vsub.f32 1.0, %v1136_v36  ;;  %1685 = vmatpush.bf16.msra.mxu2 %v3560_v15  ;;  %1778 = vmatpush.bf16.msra.mxu1 %v3560_v15 }
 0x30e   : > { %v1118_v23 = vmul.f32 %v2769_v21, %v1117_v4 }
 0x30f   : > { %v1138_v32 = vmul.f32 %v2771_v0, %v1137_v11 }
 0x310   : > { %v1119_v41 = vadd.f32 %v2769_v21, %v1118_v23  ;;  %1591 = vmatpush.bf16.msrb.mxu3 %v3569_v38  ;;  %1604 = vmatpush.bf16.msrb.mxu0 %v3571_v40 }
 0x311   : > { %v1139_v37 = vadd.f32 %v2771_v0, %v1138_v32  ;;  %1686 = vmatpush.bf16.msra.mxu2 %v3569_v38  ;;  %1779 = vmatpush.bf16.msra.mxu1 %v3569_v38 }
 0x312   : > { %v1123_v43 = vsel %vm1122_vm12, %v2769_v21, %v1119_v41 }
 0x313   : > { %v1128_v54 = vsel %vm1125_vm13, %v1127_v35, %v1123_v43  ;;  %v1143_v13 = vsel %vm1142_vm0, %v2771_v0, %v1139_v37  ;;  %v1415_v43 = vpop.f32.mrf.mxu1 }
 0x314   : > { %v1151_v49 = vmul.f32 %v1150_v34, %v1128_v54  ;;  %v1582_v42 = vpop.f32.mrf.mxu2  ;;  %1692 = vmatpush.bf16.msra.mxu3 %v3502_v7  ;;  %1759 = vmatpush.bf16.msra.mxu0 %v3432_v30  ;;  %v1148_v55 = vsel %vm1145_vm1, %v1147_v20, %v1143_v13 }
 0x315   : > { %1785 = vmatpush.bf16.msrb.mxu2 %v3502_v7  ;;  %v1156_v58 = vmul.f32 %v1148_v55, %v3477_v62 }
 0x316   : > { %v1152_v14 = vadd.f32 %v1151_v49, %v3392_v51  ;;  %v1154_v51 = vsub.f32 1.0, %v1148_v55 }
 0x318   : > { %2772 = vtanh.f32 %v1152_v14  ;;  %1693 = vmatpush.bf16.msra.mxu3 %v3510_v48  ;;  %1760 = vmatpush.bf16.msra.mxu0 %v3435_v39 }
 0x319   : > { %1786 = vmatpush.bf16.msrb.mxu2 %v3510_v48 }
 0x31c   : > { %1694 = vmatpush.bf16.msra.mxu3 %v3518_v24  ;;  %1761 = vmatpush.bf16.msra.mxu0 %v3441_v31 }
 0x31d   : > { %1787 = vmatpush.bf16.msrb.mxu2 %v3518_v24 }
 0x31e   : > { %v2773_v61 = vpop.eup %2772 }
 0x31f   : > { %v1155_v16 = vmul.f32 %v2773_v61, %v1154_v51 }
 0x320   : > { %1695 = vmatpush.bf16.msra.mxu3 %v3526_v50  ;;  %1762 = vmatpush.bf16.msra.mxu0 %v3446_v28 }
 0x321   : > { %v1157_v21 = vadd.f32 %v1156_v58, %v1155_v16  ;;  %1788 = vmatpush.bf16.msrb.mxu2 %v3526_v50 }
 0x323   : > { %1160 = vst [vmem:[#allocation5] sm:$0xff] %v1157_v21  ;;  %v1232_v6 = vpack.c.bf16 %v1157_v21, %v3477_v62 }
 0x324   : > { %1696 = vmatpush.bf16.msra.mxu3 %v3542_v17  ;;  %1763 = vmatpush.bf16.msra.mxu0 %v3452_v27 }
 0x325   : > { %1381 = vmatmul.bf16.gmra.mxu3 %v1232_v6  ;;  %1400 = vmatmul.bf16.gmra.mxu0 %v1232_v6 }
 0x326   : > { %1419 = vmatmul.bf16.gmra.mxu1 %v1232_v6  ;;  %1789 = vmatpush.bf16.msrb.mxu2 %v3542_v17 }
 0x328   : > { %1697 = vmatpush.bf16.msra.mxu3 %v3548_v63  ;;  %1764 = vmatpush.bf16.msra.mxu0 %v3457_v5 }
 0x32a   : > { %1790 = vmatpush.bf16.msrb.mxu2 %v3548_v63 }
 0x32c   : > { %1698 = vmatpush.bf16.msra.mxu3 %v3562_v18  ;;  %1765 = vmatpush.bf16.msra.mxu0 %v3461_v26 }
 0x32e   : > { %1791 = vmatpush.bf16.msrb.mxu2 %v3562_v18 }
 0x330   : > { %1699 = vmatpush.bf16.msra.mxu3 %v3571_v40  ;;  %1766 = vmatpush.bf16.msra.mxu0 %v3467_v47 }
 0x332   : > { %1792 = vmatpush.bf16.msrb.mxu2 %v3571_v40 }
 0x335   : > { %1592 = vmatmul.bf16.vlgmr.msrb.gmra.mxu3 %v3488_v59  ;;  %1605 = vmatmul.bf16.vlgmr.msrb.gmra.mxu0 %v3488_v59 }
 0x336   : > { %1852 = vmatpush.bf16.msrb.mxu3 %v3432_v30  ;;  %1865 = vmatpush.bf16.msrb.mxu0 %v3498_v53  ;;  %v1225_v30 = vld [vmem:[%s3770_s7] sm:$0x7] }
 0x337   : > { %v3648_v1 = vperm.slane %v1225_v30, 1 }
 0x33a   : > { %1853 = vmatpush.bf16.msrb.mxu3 %v3435_v39  ;;  %1866 = vmatpush.bf16.msrb.mxu0 %v3508_v46  ;;  %v1396_v39 = vpop.f32.mrf.mxu0 }
 0x33b   : > { %v1397_v3 = vadd.f32 %v1396_v39, %v3648_v1 }
 0x33e   : > { %1854 = vmatpush.bf16.msrb.mxu3 %v3441_v31  ;;  %1867 = vmatpush.bf16.msrb.mxu0 %v3516_v22  ;;  %v3632_v31 = vperm.slane %v1225_v30, 0 }
 0x342   : > { %1855 = vmatpush.bf16.msrb.mxu3 %v3446_v28  ;;  %1868 = vmatpush.bf16.msrb.mxu0 %v3524_v45  ;;  %v1377_v28 = vpop.f32.mrf.mxu3  ;;  %v3636_v62 = vpop.f32.mrf.mxu0 }
 0x346   : > { %1856 = vmatpush.bf16.msrb.mxu3 %v3452_v27  ;;  %1869 = vmatpush.bf16.msrb.mxu0 %v3540_v52  ;;  %v1378_v27 = vadd.f32 %v1377_v28, %v3632_v31 }
 0x34a   : > { %1857 = vmatpush.bf16.msrb.mxu3 %v3457_v5  ;;  %1870 = vmatpush.bf16.msrb.mxu0 %v3546_v60  ;;  %v1610_v5 = vadd.f32 %v3555_v10, %v1378_v27  ;;  %v3638_v59 = vpop.f32.mrf.mxu3 }
 0x34e   : > { %1858 = vmatpush.bf16.msrb.mxu3 %v3461_v26  ;;  %1871 = vmatpush.bf16.msrb.mxu0 %v3560_v15  ;;  %v2500_v26 = vmul.f32 -1.442695, %v1610_v5 }
 0x350   : > { %2774 = vpow2.f32 %v2500_v26 }
 0x352   : > { %1859 = vmatpush.bf16.msrb.mxu3 %v3467_v47  ;;  %1872 = vmatpush.bf16.msrb.mxu0 %v3569_v38  ;;  %v3657_v38 = vperm.slane %v1225_v30, 2 }
 0x354   : > { %v1416_v49 = vadd.f32 %v1415_v43, %v3657_v38 }
 0x356   : > { %v2775_v53 = vpop.eup %2774 }
 0x357   : > { %v1614_v22 = vadd.f32 1.0, %v2775_v53 }
 0x359   : > { %2776 = vrcp.f32 %v1614_v22  ;;  %v1626_v25 = vand.u32 2147483648, %v1614_v22  ;;  %vm1620_vm3 = vweird.f32 %v1614_v22  ;;  %v1624_v9 = vand.u32 2147483647, %v1614_v22 }
 0x35b   : > { %v1627_v35 = vor.u32 1.1754944e-38, %v1626_v25  ;;  %vm1625_vm5 = vcmp.eq.f32.partialorder %v1624_v9, 8.507059e+37 }
 0x35f   : > { %v2777_v0 = vpop.eup %2776 }
 0x360   : > { %v1616_v2 = vmul.f32 %v2777_v0, %v1614_v22  ;;  %vm1621_vm2 = vweird.f32 %v2777_v0 }
 0x361   : > { %vm1622_vm4 = vmor %vm1620_vm3, %vm1621_vm2 }
 0x362   : > { %v1617_v4 = vsub.f32 1.0, %v1616_v2  ;;  %v2623_v2 = vld [vmem:[#allocation12 + $0x20] sm:$0xff] }
 0x364   : > { %v1618_v11 = vmul.f32 %v2777_v0, %v1617_v4  ;;  %v2622_v4 = vld [vmem:[#allocation12 + $0x18] sm:$0xff] }
 0x366   : > { %v1619_v15 = vadd.f32 %v2777_v0, %v1618_v11 }
 0x368   : > { %v1623_v32 = vsel %vm1622_vm4, %v2777_v0, %v1619_v15  ;;  %v2620_v15 = vld [vmem:[#allocation12 + $0x8] sm:$0xff] }
 0x369   : > { %v1628_v34 = vsel %vm1625_vm5, %v1627_v35, %v1623_v32 }
 0x3a2   : > { %v3640_v47 = vpop.f32.mrf.mxu0 }
 0x3a8   : > { %v3642_v46 = vpop.f32.mrf.mxu3 }
 0x3aa   : > { %v3644_v45 = vpop.f32.mrf.mxu0 }
 0x3b0   : > { %v3646_v52 = vpop.f32.mrf.mxu3 }
 0x3b2   : > { %v1606_v60 = vpop.f32.mrf.mxu0 }
 0x3b3   : > { %v1653_v41 = vadd.f32 %v3654_v19, %v1606_v60  ;;  %v2624_v60 = vld [vmem:[#allocation12 + $0x28] sm:$0xff] }
 0x3b5   : > { %v1654_v54 = vmul.f32 %v1653_v41, %v1628_v34  ;;  %v2619_v41 = vld [vmem:[#allocation12] sm:$0xff] }
 0x3b7   : > { %v1655_v42 = vadd.f32 %v1654_v54, %v1416_v49 }
 0x3b8   : > { %v1593_v33 = vpop.f32.mrf.mxu3 }
 0x3b9   : > { %v1630_v36 = vadd.f32 %v1593_v33, %v1397_v3 }
 0x3ba   : > { %v1608_v8 = vpop.f32.mrf.mxu0 }
 0x3bb   : > { %v2501_v10 = vmul.f32 -1.442695, %v1630_v36 }
 0x3bd   : > { %2778 = vpow2.f32 %v2501_v10  ;;  %v2621_v10 = vld [vmem:[#allocation12 + $0x10] sm:$0xff] }
 0x3c0   : > { %v1595_v12 = vpop.f32.mrf.mxu3 }
 0x3c3   : > { %v2779_v23 = vpop.eup %2778 }
 0x3c4   : > { %v1634_v29 = vadd.f32 1.0, %v2779_v23 }
 0x3c6   : > { %2780 = vrcp.f32 %v1634_v29  ;;  %v1646_v14 = vand.u32 2147483648, %v1634_v29  ;;  %v1644_v20 = vand.u32 2147483647, %v1634_v29  ;;  %vm1640_vm7 = vweird.f32 %v1634_v29 }
 0x3c7   : > { %2782 = vtanh.f32 %v1655_v42 }
 0x3c8   : > { %v1647_v51 = vor.u32 1.1754944e-38, %v1646_v14  ;;  %vm1645_vm9 = vcmp.eq.f32.partialorder %v1644_v20, 8.507059e+37 }
 0x3cc   : > { %v2781_v37 = vpop.eup %2780 }
 0x3cd   : > { %v1636_v56 = vmul.f32 %v2781_v37, %v1634_v29  ;;  %vm1641_vm6 = vweird.f32 %v2781_v37  ;;  %v2783_v21 = vpop.eup %2782 }
 0x3ce   : > { %vm1642_vm8 = vmor %vm1640_vm7, %vm1641_vm6 }
 0x3cf   : > { %v1637_v57 = vsub.f32 1.0, %v1636_v56 }
 0x3d1   : > { %v1638_v13 = vmul.f32 %v2781_v37, %v1637_v57 }
 0x3d3   : > { %v1639_v55 = vadd.f32 %v2781_v37, %v1638_v13 }
 0x3d5   : > { %v1643_v61 = vsel %vm1642_vm8, %v2781_v37, %v1639_v55 }
 0x3d6   : > { %v1648_v16 = vsel %vm1645_vm9, %v1647_v51, %v1643_v61 }
 0x3d7   : > { %v1657_v58 = vsub.f32 1.0, %v1648_v16  ;;  %v1659_v30 = vmul.f32 %v1648_v16, %v3484_v44  ;;  %v1417_v44 = vpop.f32.mrf.mxu1 }
 0x3d8   : > { %v1418_v56 = vadd.f32 %v1417_v44, %v3657_v38 }
 0x3d9   : > { %v1658_v6 = vmul.f32 %v2783_v21, %v1657_v58 }
 0x3db   : > { %v3661_v39 = vadd.f32 %v1659_v30, %v1658_v6 }
 0x3dd   : > { %v1665_v28 = vpack.c.bf16 %v3661_v39, %v3661_v39 }
 0x3df   : > { %1674 = vmatmul.bf16.vlgmr.msrb.gmra.mxu1 %v1665_v28  ;;  %1687 = vmatmul.bf16.vlgmr.msra.gmra.mxu2 %v1665_v28  ;;  %v3673_v27 = vpop.f32.mrf.mxu1 }
 0x3e0   : > { %1700 = vmatmul.bf16.vlgmr.msra.gmra.mxu3 %v1665_v28  ;;  %1878 = vmatpush.bf16.msrb.mxu1 %v3502_v7  ;;  %v1380_v7 = vadd.f32 %v3638_v59, %v3632_v31 }
 0x3e4   : > { %1879 = vmatpush.bf16.msrb.mxu1 %v3510_v48 }
 0x3e7   : > { %v3675_v5 = vpop.f32.mrf.mxu1 }
 0x3e8   : > { %1880 = vmatpush.bf16.msrb.mxu1 %v3518_v24  ;;  %v2626_v24 = vld [vmem:[#allocation12 + $0x38] sm:$0xff] }
 0x3e9   : > { %2016 = vmatpush.bf16.msra.mxu2 %v2626_v24  ;;  %v1402_v24 = vadd.f32 %v3640_v47, %v3648_v1 }
 0x3ec   : > { %1881 = vmatpush.bf16.msrb.mxu1 %v3526_v50 }
 0x3f0   : > { %1882 = vmatpush.bf16.msrb.mxu1 %v3542_v17  ;;  %v2625_v17 = vld [vmem:[#allocation12 + $0x30] sm:$0xff] }
 0x3f1   : > { %2017 = vmatpush.bf16.msra.mxu2 %v2625_v17 }
 0x3f4   : > { %1883 = vmatpush.bf16.msrb.mxu1 %v3548_v63  ;;  %v1399_v63 = vadd.f32 %v3636_v62, %v3648_v1 }
 0x3f5   : > { %2018 = vmatpush.bf16.msra.mxu2 %v2624_v60 }
 0x3f8   : > { %1884 = vmatpush.bf16.msrb.mxu1 %v3562_v18 }
 0x3f9   : > { %2019 = vmatpush.bf16.msra.mxu2 %v2623_v2 }
 0x3fc   : > { %1885 = vmatpush.bf16.msrb.mxu1 %v3571_v40 }
 0x3fd   : > { %2020 = vmatpush.bf16.msra.mxu2 %v2622_v4 }
 0x401   : > { %2021 = vmatpush.bf16.msra.mxu2 %v2621_v10 }
 0x405   : > { %2022 = vmatpush.bf16.msra.mxu2 %v2620_v15 }
 0x409   : > { %2023 = vmatpush.bf16.msra.mxu2 %v2619_v41 }
 0x45c   : > { %v1675_v48 = vpop.f32.mrf.mxu1 }
 0x45d   : > { %v1705_v26 = vadd.f32 %v1675_v48, %v1380_v7 }
 0x45f   : > { %v2502_v50 = vmul.f32 -1.442695, %v1705_v26  ;;  %v1383_v26 = vadd.f32 %v3642_v46, %v3632_v31 }
 0x461   : > { %2784 = vpow2.f32 %v2502_v50 }
 0x462   : > { %v1688_v18 = vpop.f32.mrf.mxu2 }
 0x463   : > { %v1725_v40 = vadd.f32 %v1688_v18, %v1399_v63  ;;  %v1701_v53 = vpop.f32.mrf.mxu3 }
 0x464   : > { %v1677_v22 = vpop.f32.mrf.mxu1  ;;  %v1745_v49 = vadd.f32 %v3654_v19, %v1701_v53 }
 0x465   : > { %v2503_v0 = vmul.f32 -1.442695, %v1725_v40 }
 0x467   : > { %v2785_v59 = vpop.eup %2784  ;;  %2786 = vpow2.f32 %v2503_v0 }
 0x468   : > { %v1709_v3 = vadd.f32 1.0, %v2785_v59 }
 0x46a   : > { %2788 = vrcp.f32 %v1709_v3  ;;  %v1690_v33 = vpop.f32.mrf.mxu2  ;;  %v1721_v25 = vand.u32 2147483648, %v1709_v3  ;;  %v1719_v29 = vand.u32 2147483647, %v1709_v3  ;;  %vm1715_vm11 = vweird.f32 %v1709_v3 }
 0x46b   : > { %v1703_v36 = vpop.f32.mrf.mxu3  ;;  %v3697_v33 = vld [vmem:[%s3773_s10] ss:$0 sm:$0xff] }
 0x46c   : > { %v1722_v34 = vor.u32 1.1754944e-38, %v1721_v25  ;;  %vm1720_vm13 = vcmp.eq.f32.partialorder %v1719_v29, 8.507059e+37 }
 0x46d   : > { %v2787_v8 = vpop.eup %2786 }
 0x46e   : > { %v1729_v62 = vadd.f32 1.0, %v2787_v8 }
 0x470   : > { %v2789_v11 = vpop.eup %2788  ;;  %2790 = vrcp.f32 %v1729_v62  ;;  %v1741_v14 = vand.u32 2147483648, %v1729_v62  ;;  %v1739_v20 = vand.u32 2147483647, %v1729_v62  ;;  %vm1735_vm15 = vweird.f32 %v1729_v62 }
 0x471   : > { %v1711_v12 = vmul.f32 %v2789_v11, %v1709_v3  ;;  %vm1716_vm10 = vweird.f32 %v2789_v11 }
 0x472   : > { %vm1717_vm12 = vmor %vm1715_vm11, %vm1716_vm10  ;;  %v1742_v61 = vor.u32 1.1754944e-38, %v1741_v14  ;;  %vm1740_vm1 = vcmp.eq.f32.partialorder %v1739_v20, 8.507059e+37 }
 0x473   : > { %v1712_v23 = vsub.f32 1.0, %v1711_v12 }
 0x475   : > { %v1713_v9 = vmul.f32 %v2789_v11, %v1712_v23 }
 0x476   : > { %v2791_v32 = vpop.eup %2790 }
 0x477   : > { %v1731_v35 = vmul.f32 %v2791_v32, %v1729_v62  ;;  %v1714_v43 = vadd.f32 %v2789_v11, %v1713_v9  ;;  %vm1736_vm14 = vweird.f32 %v2791_v32 }
 0x478   : > { %vm1737_vm0 = vmor %vm1735_vm15, %vm1736_vm14 }
 0x479   : > { %v1732_v54 = vsub.f32 1.0, %v1731_v35  ;;  %v1718_v37 = vsel %vm1717_vm12, %v2789_v11, %v1714_v43 }
 0x47a   : > { %v1723_v42 = vsel %vm1720_vm13, %v1722_v34, %v1718_v37 }
 0x47b   : > { %v1733_v57 = vmul.f32 %v2791_v32, %v1732_v54  ;;  %v1746_v13 = vmul.f32 %v1745_v49, %v1723_v42  ;;  %v1421_v54 = vadd.f32 %v3673_v27, %v3657_v38 }
 0x47d   : > { %v1734_v55 = vadd.f32 %v2791_v32, %v1733_v57  ;;  %v1747_v51 = vadd.f32 %v1746_v13, %v1418_v56 }
 0x47f   : > { %v1738_v16 = vsel %vm1737_vm0, %v2791_v32, %v1734_v55  ;;  %2792 = vtanh.f32 %v1747_v51 }
 0x480   : > { %v1743_v58 = vsel %vm1740_vm1, %v1742_v61, %v1738_v16 }
 0x481   : > { %v1749_v21 = vsub.f32 1.0, %v1743_v58  ;;  %v1751_v28 = vmul.f32 %v1743_v58, %v3661_v39 }
 0x485   : > { %v2793_v6 = vpop.eup %2792 }
 0x486   : > { %v1750_v30 = vmul.f32 %v2793_v6, %v1749_v21  ;;  %v1404_v6 = vadd.f32 %v3644_v45, %v3648_v1 }
 0x488   : > { %v3684_v44 = vadd.f32 %v1751_v28, %v1750_v30 }
 0x48a   : > { %v1758_v7 = vpack.c.bf16 %v3684_v44, %v3684_v44  ;;  %v1946_v48 = vpack.c.bf16 %v3684_v44, %v3661_v39 }
 0x48c   : > { %1767 = vmatmul.bf16.vlgmr.msra.gmra.mxu0 %v1758_v7  ;;  %1780 = vmatmul.bf16.vlgmr.msra.gmra.mxu1 %v1758_v7 }
 0x48d   : > { %1793 = vmatmul.bf16.vlgmr.msrb.gmra.mxu2 %v1758_v7 }
 0x49d   : > { %2024 = vmatmul.bf16.vlgmr.msra.gmra.mxu2 %v1946_v48 }
 0x509   : > { %v1768_v50 = vpop.f32.mrf.mxu0  ;;  %v1781_v17 = vpop.f32.mrf.mxu1 }
 0x50a   : > { %v1798_v63 = vadd.f32 %v1768_v50, %v1383_v26  ;;  %v1818_v18 = vadd.f32 %v1781_v17, %v1402_v24  ;;  %v1385_v24 = vadd.f32 %v3646_v52, %v3632_v31 }
 0x50c   : > { %v2504_v40 = vmul.f32 -1.442695, %v1798_v63  ;;  %v2505_v53 = vmul.f32 -1.442695, %v1818_v18 }
 0x50e   : > { %2794 = vpow2.f32 %v2504_v40 }
 0x50f   : > { %2796 = vpow2.f32 %v2505_v53 }
 0x510   : > { %v1794_v22 = vpop.f32.mrf.mxu2 }
 0x511   : > { %v1770_v60 = vpop.f32.mrf.mxu0  ;;  %v1783_v0 = vpop.f32.mrf.mxu1  ;;  %v1838_v35 = vadd.f32 %v3654_v19, %v1794_v22 }
 0x514   : > { %v2795_v2 = vpop.eup %2794 }
 0x515   : > { %v2797_v39 = vpop.eup %2796  ;;  %v1802_v59 = vadd.f32 1.0, %v2795_v2 }
 0x516   : > { %v1822_v3 = vadd.f32 1.0, %v2797_v39 }
 0x517   : > { %2798 = vrcp.f32 %v1802_v59  ;;  %v1814_v12 = vand.u32 2147483648, %v1802_v59  ;;  %v1812_v25 = vand.u32 2147483647, %v1802_v59  ;;  %vm1808_vm3 = vweird.f32 %v1802_v59 }
 0x518   : > { %2800 = vrcp.f32 %v1822_v3  ;;  %v1796_v47 = vpop.f32.mrf.mxu2  ;;  %v1834_v37 = vand.u32 2147483648, %v1822_v3  ;;  %vm1828_vm7 = vweird.f32 %v1822_v3  ;;  %v1832_v42 = vand.u32 2147483647, %v1822_v3 }
 0x519   : > { %v1815_v32 = vor.u32 1.1754944e-38, %v1814_v12  ;;  %vm1813_vm5 = vcmp.eq.f32.partialorder %v1812_v25, 8.507059e+37 }
 0x51a   : > { %v1835_v20 = vor.u32 1.1754944e-38, %v1834_v37  ;;  %vm1833_vm9 = vcmp.eq.f32.partialorder %v1832_v42, 8.507059e+37 }
 0x51d   : > { %v2799_v46 = vpop.eup %2798 }
 0x51e   : > { %v2801_v36 = vpop.eup %2800  ;;  %v1804_v4 = vmul.f32 %v2799_v46, %v1802_v59  ;;  %vm1809_vm2 = vweird.f32 %v2799_v46 }
 0x51f   : > { %v1824_v8 = vmul.f32 %v2801_v36, %v1822_v3  ;;  %vm1810_vm4 = vmor %vm1808_vm3, %vm1809_vm2  ;;  %vm1829_vm6 = vweird.f32 %v2801_v36 }
 0x520   : > { %v1805_v62 = vsub.f32 1.0, %v1804_v4  ;;  %v2025_v10 = vpop.f32.mrf.mxu2  ;;  %vm1830_vm8 = vmor %vm1828_vm7, %vm1829_vm6 }
 0x521   : > { %v1825_v11 = vsub.f32 1.0, %v1824_v8  ;;  %v2026_v15 = vadd.f32 %v3697_v33, %v2025_v10 }
 0x522   : > { %v1806_v23 = vmul.f32 %v2799_v46, %v1805_v62 }
 0x523   : > { %v1826_v9 = vmul.f32 %v2801_v36, %v1825_v11  ;;  %2035 = vst [vmem:[%s3211_s29] sm:$0xff] %v2026_v15  ;;  %v1423_v11 = vadd.f32 %v3675_v5, %v3657_v38 }
 0x524   : > { %v1807_v29 = vadd.f32 %v2799_v46, %v1806_v23 }
 0x525   : > { %v1827_v43 = vadd.f32 %v2801_v36, %v1826_v9 }
 0x526   : > { %v1811_v41 = vsel %vm1810_vm4, %v2799_v46, %v1807_v29 }
 0x527   : > { %v1816_v34 = vsel %vm1813_vm5, %v1815_v32, %v1811_v41  ;;  %v1831_v13 = vsel %vm1830_vm8, %v2801_v36, %v1827_v43 }
 0x528   : > { %v1839_v49 = vmul.f32 %v1838_v35, %v1816_v34  ;;  %v2027_v56 = vpop.f32.mrf.mxu2  ;;  %v1836_v55 = vsel %vm1833_vm9, %v1835_v20, %v1831_v13 }
 0x529   : > { %v2028_v57 = vadd.f32 %v3697_v33, %v2027_v56  ;;  %v1842_v51 = vsub.f32 1.0, %v1836_v55  ;;  %v1844_v27 = vmul.f32 %v1836_v55, %v3684_v44 }
 0x52a   : > { %v1840_v14 = vadd.f32 %v1839_v49, %v1421_v54 }
 0x52b   : > { %2036 = vst [vmem:[%s3211_s29 + $0x8] sm:$0xff] %v2028_v57 }
 0x52c   : > { %2802 = vtanh.f32 %v1840_v14 }
 0x532   : > { %v2803_v61 = vpop.eup %2802 }
 0x533   : > { %v1843_v16 = vmul.f32 %v2803_v61, %v1842_v51 }
 0x535   : > { %v3707_v58 = vadd.f32 %v1844_v27, %v1843_v16 }
 0x537   : > { %v1851_v21 = vpack.c.bf16 %v3707_v58, %v3707_v58 }
 0x539   : > { %1860 = vmatmul.bf16.vlgmr.msrb.gmra.mxu3 %v1851_v21  ;;  %1873 = vmatmul.bf16.vlgmr.msrb.gmra.mxu0 %v1851_v21 }
 0x53a   : > { %1886 = vmatmul.bf16.vlgmr.msrb.gmra.mxu1 %v1851_v21 }
 0x5b6   : > { %v1874_v30 = vpop.f32.mrf.mxu0 }
 0x5b7   : > { %v1911_v28 = vadd.f32 %v1874_v30, %v1404_v6  ;;  %v1887_v7 = vpop.f32.mrf.mxu1 }
 0x5b8   : > { %v1931_v4 = vadd.f32 %v3654_v19, %v1887_v7 }
 0x5b9   : > { %v2507_v48 = vmul.f32 -1.442695, %v1911_v28 }
 0x5bb   : > { %2804 = vpow2.f32 %v2507_v48 }
 0x5bc   : > { %v1861_v44 = vpop.f32.mrf.mxu3 }
 0x5bd   : > { %v1891_v26 = vadd.f32 %v1861_v44, %v1385_v24 }
 0x5be   : > { %v1876_v50 = vpop.f32.mrf.mxu0 }
 0x5bf   : > { %v2506_v17 = vmul.f32 -1.442695, %v1891_v26  ;;  %v1889_v63 = vpop.f32.mrf.mxu1 }
 0x5c1   : > { %v2805_v18 = vpop.eup %2804  ;;  %2806 = vpow2.f32 %v2506_v17 }
 0x5c2   : > { %v1915_v40 = vadd.f32 1.0, %v2805_v18 }
 0x5c4   : > { %v1863_v53 = vpop.f32.mrf.mxu3  ;;  %2808 = vrcp.f32 %v1915_v40  ;;  %v1927_v12 = vand.u32 2147483648, %v1915_v40  ;;  %vm1921_vm15 = vweird.f32 %v1915_v40  ;;  %v1925_v23 = vand.u32 2147483647, %v1915_v40 }
 0x5c6   : > { %v1928_v29 = vor.u32 1.1754944e-38, %v1927_v12  ;;  %vm1926_vm1 = vcmp.eq.f32.partialorder %v1925_v23, 8.507059e+37 }
 0x5c7   : > { %v2807_v22 = vpop.eup %2806 }
 0x5c8   : > { %v1895_v45 = vadd.f32 1.0, %v2807_v22 }
 0x5ca   : > { %2810 = vrcp.f32 %v1895_v45  ;;  %v2809_v1 = vpop.eup %2808  ;;  %v1907_v52 = vand.u32 2147483648, %v1895_v45  ;;  %v1905_v3 = vand.u32 2147483647, %v1895_v45  ;;  %vm1901_vm11 = vweird.f32 %v1895_v45 }
 0x5cb   : > { %v1917_v60 = vmul.f32 %v2809_v1, %v1915_v40  ;;  %vm1922_vm14 = vweird.f32 %v2809_v1 }
 0x5cc   : > { %v1908_v36 = vor.u32 1.1754944e-38, %v1907_v52  ;;  %vm1906_vm13 = vcmp.eq.f32.partialorder %v1905_v3, 8.507059e+37  ;;  %vm1923_vm0 = vmor %vm1921_vm15, %vm1922_vm14 }
 0x5cd   : > { %v1918_v39 = vsub.f32 1.0, %v1917_v60 }
 0x5cf   : > { %v1919_v47 = vmul.f32 %v2809_v1, %v1918_v39 }
 0x5d0   : > { %v2811_v0 = vpop.eup %2810 }
 0x5d1   : > { %v1897_v2 = vmul.f32 %v2811_v0, %v1895_v45  ;;  %vm1902_vm10 = vweird.f32 %v2811_v0  ;;  %v1920_v10 = vadd.f32 %v2809_v1, %v1919_v47 }
 0x5d2   : > { %vm1903_vm12 = vmor %vm1901_vm11, %vm1902_vm10 }
 0x5d3   : > { %v1898_v31 = vsub.f32 1.0, %v1897_v2  ;;  %v1924_v9 = vsel %vm1923_vm0, %v2809_v1, %v1920_v10 }
 0x5d4   : > { %v1929_v19 = vsel %vm1926_vm1, %v1928_v29, %v1924_v9 }
 0x5d5   : > { %v1899_v59 = vmul.f32 %v2811_v0, %v1898_v31  ;;  %v1935_v32 = vsub.f32 1.0, %v1929_v19  ;;  %v1937_v43 = vmul.f32 %v1929_v19, %v3707_v58 }
 0x5d7   : > { %v1900_v46 = vadd.f32 %v2811_v0, %v1899_v59 }
 0x5d9   : > { %v1904_v8 = vsel %vm1903_vm12, %v2811_v0, %v1900_v46 }
 0x5da   : > { %v1909_v62 = vsel %vm1906_vm13, %v1908_v36, %v1904_v8 }
 0x5db   : > { %v1932_v15 = vmul.f32 %v1931_v4, %v1909_v62 }
 0x5dd   : > { %v1933_v25 = vadd.f32 %v1932_v15, %v1423_v11 }
 0x5df   : > { %2812 = vtanh.f32 %v1933_v25 }
 0x5e5   : > { %v2813_v41 = vpop.eup %2812 }
 0x5e6   : > { %v1936_v35 = vmul.f32 %v2813_v41, %v1935_v32 }
 0x5e8   : > { %v1938_v38 = vadd.f32 %v1937_v43, %v1936_v35 }
 0x5ea   : > { %1941 = vst [vmem:[#allocation5 + $0x8] sm:$0xff] %v1938_v38  ;;  %v1947_v5 = vpack.c.bf16 %v1938_v38, %v3707_v58 }
 0x5ec   : > { %2029 = vmatmul.bf16.gmra.mxu2 %v1947_v5 }
 0x66f   : > { %v2030_v34 = vpop.f32.mrf.mxu2 }
 0x670   : > { %v2031_v54 = vadd.f32 %v3697_v33, %v2030_v34 }
 0x672   : > { %2037 = vst [vmem:[%s3211_s29 + $0x10] sm:$0xff] %v2031_v54 }
 0x677   : > { %v2032_v37 = vpop.f32.mrf.mxu2 }
 0x678   : > { %v2033_v49 = vadd.f32 %v3697_v33, %v2032_v37 }
 0x67a   : > { %2038 = vst [vmem:[%s3211_s29 + $0x18] sm:$0xff] %v2033_v49 }
 0x67b   : > { %2961 = shalt.err (!%p2958_p10)
}
 0x67c   : > { %s3035_s2 = smov 128   ;;  %s3036_s29 = smov 8  }
 0x67d   : > { %2644 = dma.vmem_to_hbm [thread:$0]  (%p3137_p4), %s2055_s24, 512, %s2057_s28, %s2040_s14, %s3035_s2, %s3035_s2, %s3036_s29  }
 0x67e PF: > { %s3801_s5 = sld [smem:[#allocation22_spill]] }
 0x67f   : > { %s3802_s11 = sld [smem:[#allocation19_spill]] }
 0x684   : > { %p2671_p11 = scmp.ge.s32.totalorder %s3801_s5, 2 }
 0x685   : > { %s2071_s19 = sand.u32 1, %s3802_s11  }
 0x686   : > { %p2660_p12 = pnand %p2671_p11, %p3144_p8  ;;  %s2072_s22 = scalar_lea.sflag [#allocation8], %s2071_s19 }
 0x688   : > { %p2661_p13 = pneg %p2660_p12 }
 0x68a   : > { %2999 = dma.done.wait (%p2661_p13), %s2072_s22, 512  }
 0x68b   : > { %3001 = vsyncadd (%p2661_p13), %s2072_s22, 4294966784  ;;  %s27_s22 = sadd.s32 1, %s3801_s5   ;;  %s3804_s25 = sld [smem:[#allocation20_spill]] }
 0x68c   : > { %p24_p0 = scmp.ge.s32.totalorder %s27_s22, 4   ;;  %s3805_s19 = sld [smem:[#allocation25_spill]] }
 0x68d   : > { %s3806_s20 = sld [smem:[#allocation21_spill]]  ;;  %s3808_s17 = smov %s3008_s18 }
 0x68e   : > { %s3807_s21 = sld [smem:[#allocation23_spill]]  ;;  %26 = sbr.rel (!%p24_p0) target bundleno = 11 (0xb), region = 131 }
 0x691   : > { %s3809_s18 = smov %s3804_s25 }
 0x693   :  { %2078 = vsyncpa [#allocation7], 1 }
 0x694   :  { %2080 = vsyncpa [#allocation7 + $0x1], 1 }
 0x695   :  { %2081 = vsyncpa [#allocation10], 1 }
 0x696   :  { %2082 = vsyncpa [#allocation13], 1 }
 0x697   :  { %2083 = vsyncpa [#allocation8], 1 }
 0x698   :  { %2085 = vsyncpa [#allocation8 + $0x1], 1 }

</bundles_post_ra>
